<compile_context>
chip_gen: v6e
topology: v6e:2x2x1
jax: 0.10.0
libtpu: 0.0.40
codegen_flags: <defaults>
</compile_context>

<pallas_src>
import functools

import jax
import jax.numpy as jnp
from jax.experimental import pallas as pl
from jax.experimental.pallas import tpu as pltpu


def _round_up(x, m):
    return (x + m - 1) // m * m


def _autoencoder_kernel(x_ref,
                        w1_ref, b1_ref, w2_ref, b2_ref,
                        w34_ref, b34_ref, w5_ref, b5_ref,
                        w6_ref, b6_ref,
                        o_ref):
    """Fused encoder+decoder MLP for one batch tile.

    bf16 matmul operands and bf16 inter-layer activations (MXU fast path,
    halves VMEM load/store bytes); f32 accumulation, bias add and output.
    Layers 3 and 4 (no ReLU between them) were pre-fused in prepare_params().
    """
    h = x_ref[...].astype(jnp.bfloat16)                     # [tb, feat_pad]
    for w_ref, b_ref in ((w1_ref, b1_ref), (w2_ref, b2_ref),
                         (w34_ref, b34_ref), (w5_ref, b5_ref)):
        acc = jnp.dot(h, w_ref[...], preferred_element_type=jnp.float32)
        h = jnp.maximum(acc + b_ref[...], 0.0).astype(jnp.bfloat16)
    y = jnp.dot(h, w6_ref[...], preferred_element_type=jnp.float32) + b6_ref[...]
    o_ref[...] = y.astype(o_ref.dtype)                      # [tb, feat_pad] f32


def _resident_spec(shape, single_buffer):
    # Full-array block with a constant index_map: same block every grid step,
    # so the weight/bias stays resident in VMEM across the batch loop.
    kwargs = {}
    if single_buffer:
        kwargs["pipeline_mode"] = pl.Buffered(1)   # no per-step double-buffer
    return pl.BlockSpec(shape, lambda i: (0,) * len(shape), **kwargs)


def _choose_tiling(batch, tile_b):
    """Batch tile (multiple of 8), padded batch size, and grid length."""
    tile_b = max(8, _round_up(tile_b, 8))
    b8 = _round_up(batch, 8)
    n_steps = pl.cdiv(b8, tile_b)
    # Guarantee >= 2 grid steps when the batch allows >= 128 MXU rows per tile:
    # the batch axis is 'parallel', so this shards across v7x's 2 TensorCores.
    if n_steps == 1 and b8 >= 256:
        n_steps = 2
    tile = _round_up(pl.cdiv(b8, n_steps), 8)   # even split -> tiny padding tail
    return tile, n_steps * tile, n_steps


@functools.partial(jax.jit,
                   static_argnames=("in_dim", "tile_b", "single_buffer_weights"))
def _forward(x, weights, biases, *, in_dim, tile_b, single_buffer_weights):
    B = x.shape[0]
    feat_pad = weights[0].shape[0]              # padded rows of W1

    # Pad feature dim of x to 128 lanes (weights were pre-padded).
    if feat_pad != in_dim:
        x = jnp.pad(x, ((0, 0), (0, feat_pad - in_dim)))

    tile, b_pad, n_steps = _choose_tiling(B, tile_b)
    if b_pad != B:
        x = jnp.pad(x, ((0, b_pad - B), (0, 0)))

    in_specs = [pl.BlockSpec((tile, feat_pad), lambda i: (i, 0))]
    flat_args = [x]
    for w, b in zip(weights, biases):
        in_specs.append(_resident_spec(w.shape, single_buffer_weights))
        in_specs.append(_resident_spec(b.shape, single_buffer_weights))
        flat_args.append(w)
        flat_args.append(b)

    out = pl.pallas_call(
        _autoencoder_kernel,
        out_shape=jax.ShapeDtypeStruct((b_pad, feat_pad), jnp.float32),
        grid=(n_steps,),
        in_specs=in_specs,
        out_specs=pl.BlockSpec((tile, feat_pad), lambda i: (i, 0)),
        compiler_params=pltpu.CompilerParams(
            dimension_semantics=("parallel",)),
    )(*flat_args)

    return out[:B, :in_dim]


def prepare_params(params):
    """One-time weight preprocessing (hoisted out of the per-call path).

    Fuses the ReLU-free Linear pair (encoder latent projection -> decoder first
    layer), zero-pads the feature dim to a multiple of 128 lanes, and casts the
    matmul operands to bf16. Biases stay f32 (added post-accumulation).
    """
    (w1, b1), (w2, b2), (w3, b3), (w4, b4), (w5, b5), (w6, b6) = params
    for (w, b) in params:
        assert b.ndim == 2 and b.shape == (1, w.shape[1]), (
            "biases must have shape (1, out_features)")
    in_dim = int(w1.shape[0])
    assert int(w6.shape[1]) == in_dim

    # z = h@W3 + b3 ; h' = z@W4 + b4   ==>   h' = h@(W3@W4) + (b3@W4 + b4)
    w34 = w3 @ w4                      # [256, 256] f32
    b34 = b3 @ w4 + b4                 # [1, 256]   f32

    feat_pad = _round_up(in_dim, 128)
    if feat_pad != in_dim:
        pad = feat_pad - in_dim
        w1 = jnp.pad(w1, ((0, pad), (0, 0)))   # zero extra in-feature rows
        w6 = jnp.pad(w6, ((0, 0), (0, pad)))   # zero extra out-feature cols
        b6 = jnp.pad(b6, ((0, 0), (0, pad)))

    weights = tuple(w.astype(jnp.bfloat16) for w in (w1, w2, w34, w5, w6))
    biases = tuple(b.astype(jnp.float32) for b in (b1, b2, b34, b5, b6))
    return weights, biases, in_dim


def autoencoder_forward(x, prepared, tile_b=512):
    """x: [B, input_size] f32; prepared = prepare_params(params)."""
    weights, biases, in_dim = prepared
    try:
        return _forward(x, weights, biases, in_dim=in_dim, tile_b=tile_b,
                        single_buffer_weights=True)
    except Exception:
        # Fallback for Pallas versions where pl.Buffered(1) on the resident
        # operands does not lower; identical kernel, default double-buffering.
        return _forward(x, weights, biases, in_dim=in_dim, tile_b=tile_b,
                        single_buffer_weights=False)


def init_params(key, input_size, latent_dim):
    """Deterministic init mimicking nn.Linear default U(-1/sqrt(fan_in), +)."""
    dims = [(input_size, 512), (512, 256), (256, latent_dim),
            (latent_dim, 256), (256, 512), (512, input_size)]
    params = []
    for (fan_in, fan_out) in dims:
        key, kw, kb = jax.random.split(key, 3)
        bound = 1.0 / jnp.sqrt(fan_in)
        # Stored already transposed: [in, out]
        w_t = jax.random.uniform(kw, (fan_in, fan_out), jnp.float32, -bound, bound)
        b = jax.random.uniform(kb, (1, fan_out), jnp.float32, -bound, bound)
        params.append((w_t, b))
    return tuple(params)


def reference_forward(x, params):
    """Pure-JAX f32 reference matching the PyTorch module semantics."""
    h = x
    for idx, (w, b) in enumerate(params):
        h = h @ w + b
        if idx not in (2, 5):  # no ReLU after latent projection / final layer
            h = jnp.maximum(h, 0.0)
    return h


if __name__ == "__main__":
    key = jax.random.PRNGKey(0)
    input_size = 64
    latent_dim = 32
    batch = 8

    kx, kp = jax.random.split(key)
    x = jax.random.normal(kx, (batch, input_size), jnp.float32)
    params = init_params(kp, input_size, latent_dim)
    prepared = prepare_params(params)

    out = autoencoder_forward(x, prepared)
    out = jax.block_until_ready(out)

    ref = reference_forward(x, params)
    assert out.shape == (batch, input_size)
    # bf16 matmul operands / activations + fused L3/L4 shift low-order bits
    # relative to the f32 reference.
    assert jnp.allclose(out, ref, atol=5e-2, rtol=5e-2), (
        float(jnp.max(jnp.abs(out - ref))))

    print("KERNEL_OK")
</pallas_src>

<mosaic_0001>
module attributes {stable_mosaic.version = 11 : i64} {
  func.func @_autoencoder_kernel(%arg0: i32, %arg1: memref<8x128xf32, #tpu.memory_space<vmem>>, %arg2: memref<128x512xbf16, #tpu.memory_space<vmem>>, %arg3: memref<1x512xf32, #tpu.memory_space<vmem>>, %arg4: memref<512x256xbf16, #tpu.memory_space<vmem>>, %arg5: memref<1x256xf32, #tpu.memory_space<vmem>>, %arg6: memref<256x256xbf16, #tpu.memory_space<vmem>>, %arg7: memref<1x256xf32, #tpu.memory_space<vmem>>, %arg8: memref<256x512xbf16, #tpu.memory_space<vmem>>, %arg9: memref<1x512xf32, #tpu.memory_space<vmem>>, %arg10: memref<512x128xbf16, #tpu.memory_space<vmem>>, %arg11: memref<1x128xf32, #tpu.memory_space<vmem>>, %arg12: memref<8x128xf32, #tpu.memory_space<vmem>>) attributes {dimension_semantics = [#tpu.dimension_semantics<parallel>], iteration_bounds = array<i64: 1>, scalar_prefetch = 0 : i64, scratch_operands = 0 : i64, tpu.core_type = #tpu.core_type<tc>, window_params = [{transform_indices = @transform_0, window_bounds = array<i64: 8, 128>}, {pipeline_mode = #tpu.pipeline_mode<synchronous>, transform_indices = @transform_1, window_bounds = array<i64: 128, 512>}, {pipeline_mode = #tpu.pipeline_mode<synchronous>, transform_indices = @transform_2, window_bounds = array<i64: 1, 512>}, {pipeline_mode = #tpu.pipeline_mode<synchronous>, transform_indices = @transform_3, window_bounds = array<i64: 512, 256>}, {pipeline_mode = #tpu.pipeline_mode<synchronous>, transform_indices = @transform_4, window_bounds = array<i64: 1, 256>}, {pipeline_mode = #tpu.pipeline_mode<synchronous>, transform_indices = @transform_5, window_bounds = array<i64: 256, 256>}, {pipeline_mode = #tpu.pipeline_mode<synchronous>, transform_indices = @transform_6, window_bounds = array<i64: 1, 256>}, {pipeline_mode = #tpu.pipeline_mode<synchronous>, transform_indices = @transform_7, window_bounds = array<i64: 256, 512>}, {pipeline_mode = #tpu.pipeline_mode<synchronous>, transform_indices = @transform_8, window_bounds = array<i64: 1, 512>}, {pipeline_mode = #tpu.pipeline_mode<synchronous>, transform_indices = @transform_9, window_bounds = array<i64: 512, 128>}, {pipeline_mode = #tpu.pipeline_mode<synchronous>, transform_indices = @transform_10, window_bounds = array<i64: 1, 128>}, {transform_indices = @transform_11, window_bounds = array<i64: 8, 128>}]} {
    %c0 = arith.constant 0 : index
    %c0_0 = arith.constant 0 : index
    %0 = vector.load %arg1[%c0, %c0_0] : memref<8x128xf32, #tpu.memory_space<vmem>>, vector<8x128xf32>
    %1 = arith.truncf %0 : vector<8x128xf32> to vector<8x128xbf16>
    %c0_1 = arith.constant 0 : index
    %c0_2 = arith.constant 0 : index
    %2 = vector.load %arg2[%c0_1, %c0_2] : memref<128x512xbf16, #tpu.memory_space<vmem>>, vector<128x512xbf16>
    %cst = arith.constant dense<0.000000e+00> : vector<8x512xf32>
    %3 = tpu.matmul %1, %2, %cst {dimension_numbers = #tpu.dot_dimension_numbers<[1], [0], [0], [1], [0, 0, 1, 1], [], []>} : vector<8x128xbf16>, vector<128x512xbf16>, vector<8x512xf32> -> vector<8x512xf32>
    %c0_3 = arith.constant 0 : index
    %c0_4 = arith.constant 0 : index
    %4 = vector.load %arg3[%c0_3, %c0_4] : memref<1x512xf32, #tpu.memory_space<vmem>>, vector<1x512xf32>
    %5 = vector.broadcast %4 : vector<1x512xf32> to vector<8x512xf32>
    %6 = arith.addf %3, %5 : vector<8x512xf32>
    %cst_5 = arith.constant 0.000000e+00 : f32
    %7 = vector.broadcast %cst_5 : f32 to vector<8x512xf32>
    %8 = arith.maximumf %6, %7 : vector<8x512xf32>
    %9 = arith.truncf %8 : vector<8x512xf32> to vector<8x512xbf16>
    %c0_6 = arith.constant 0 : index
    %c0_7 = arith.constant 0 : index
    %10 = vector.load %arg4[%c0_6, %c0_7] : memref<512x256xbf16, #tpu.memory_space<vmem>>, vector<512x256xbf16>
    %cst_8 = arith.constant dense<0.000000e+00> : vector<8x256xf32>
    %11 = tpu.matmul %9, %10, %cst_8 {dimension_numbers = #tpu.dot_dimension_numbers<[1], [0], [0], [1], [0, 0, 1, 1], [], []>} : vector<8x512xbf16>, vector<512x256xbf16>, vector<8x256xf32> -> vector<8x256xf32>
    %c0_9 = arith.constant 0 : index
    %c0_10 = arith.constant 0 : index
    %12 = vector.load %arg5[%c0_9, %c0_10] : memref<1x256xf32, #tpu.memory_space<vmem>>, vector<1x256xf32>
    %13 = vector.broadcast %12 : vector<1x256xf32> to vector<8x256xf32>
    %14 = arith.addf %11, %13 : vector<8x256xf32>
    %cst_11 = arith.constant 0.000000e+00 : f32
    %15 = vector.broadcast %cst_11 : f32 to vector<8x256xf32>
    %16 = arith.maximumf %14, %15 : vector<8x256xf32>
    %17 = arith.truncf %16 : vector<8x256xf32> to vector<8x256xbf16>
    %c0_12 = arith.constant 0 : index
    %c0_13 = arith.constant 0 : index
    %18 = vector.load %arg6[%c0_12, %c0_13] : memref<256x256xbf16, #tpu.memory_space<vmem>>, vector<256x256xbf16>
    %cst_14 = arith.constant dense<0.000000e+00> : vector<8x256xf32>
    %19 = tpu.matmul %17, %18, %cst_14 {dimension_numbers = #tpu.dot_dimension_numbers<[1], [0], [0], [1], [0, 0, 1, 1], [], []>} : vector<8x256xbf16>, vector<256x256xbf16>, vector<8x256xf32> -> vector<8x256xf32>
    %c0_15 = arith.constant 0 : index
    %c0_16 = arith.constant 0 : index
    %20 = vector.load %arg7[%c0_15, %c0_16] : memref<1x256xf32, #tpu.memory_space<vmem>>, vector<1x256xf32>
    %21 = vector.broadcast %20 : vector<1x256xf32> to vector<8x256xf32>
    %22 = arith.addf %19, %21 : vector<8x256xf32>
    %cst_17 = arith.constant 0.000000e+00 : f32
    %23 = vector.broadcast %cst_17 : f32 to vector<8x256xf32>
    %24 = arith.maximumf %22, %23 : vector<8x256xf32>
    %25 = arith.truncf %24 : vector<8x256xf32> to vector<8x256xbf16>
    %c0_18 = arith.constant 0 : index
    %c0_19 = arith.constant 0 : index
    %26 = vector.load %arg8[%c0_18, %c0_19] : memref<256x512xbf16, #tpu.memory_space<vmem>>, vector<256x512xbf16>
    %cst_20 = arith.constant dense<0.000000e+00> : vector<8x512xf32>
    %27 = tpu.matmul %25, %26, %cst_20 {dimension_numbers = #tpu.dot_dimension_numbers<[1], [0], [0], [1], [0, 0, 1, 1], [], []>} : vector<8x256xbf16>, vector<256x512xbf16>, vector<8x512xf32> -> vector<8x512xf32>
    %c0_21 = arith.constant 0 : index
    %c0_22 = arith.constant 0 : index
    %28 = vector.load %arg9[%c0_21, %c0_22] : memref<1x512xf32, #tpu.memory_space<vmem>>, vector<1x512xf32>
    %29 = vector.broadcast %28 : vector<1x512xf32> to vector<8x512xf32>
    %30 = arith.addf %27, %29 : vector<8x512xf32>
    %cst_23 = arith.constant 0.000000e+00 : f32
    %31 = vector.broadcast %cst_23 : f32 to vector<8x512xf32>
    %32 = arith.maximumf %30, %31 : vector<8x512xf32>
    %33 = arith.truncf %32 : vector<8x512xf32> to vector<8x512xbf16>
    %c0_24 = arith.constant 0 : index
    %c0_25 = arith.constant 0 : index
    %34 = vector.load %arg10[%c0_24, %c0_25] : memref<512x128xbf16, #tpu.memory_space<vmem>>, vector<512x128xbf16>
    %cst_26 = arith.constant dense<0.000000e+00> : vector<8x128xf32>
    %35 = tpu.matmul %33, %34, %cst_26 {dimension_numbers = #tpu.dot_dimension_numbers<[1], [0], [0], [1], [0, 0, 1, 1], [], []>} : vector<8x512xbf16>, vector<512x128xbf16>, vector<8x128xf32> -> vector<8x128xf32>
    %c0_27 = arith.constant 0 : index
    %c0_28 = arith.constant 0 : index
    %36 = vector.load %arg11[%c0_27, %c0_28] : memref<1x128xf32, #tpu.memory_space<vmem>>, vector<1x128xf32>
    %37 = vector.broadcast %36 : vector<1x128xf32> to vector<8x128xf32>
    %38 = arith.addf %35, %37 : vector<8x128xf32>
    %c0_29 = arith.constant 0 : index
    %c0_30 = arith.constant 0 : index
    %39 = vector.load %arg12[%c0_29, %c0_30] : memref<8x128xf32, #tpu.memory_space<vmem>>, vector<8x128xf32>
    tpu.vector_store %arg12[%c0_29, %c0_30], %38 {strides = array<i32>} : memref<8x128xf32, #tpu.memory_space<vmem>>, vector<8x128xf32>,
    return
  }
  func.func @transform_0(%arg0: i32) -> (i32, i32) {
    %c0_i32 = arith.constant 0 : i32
    %c0_i32_0 = arith.constant 0 : i32
    return %arg0, %c0_i32 : i32, i32
  }
  func.func @transform_1(%arg0: i32) -> (i32, i32) {
    %c0_i32 = arith.constant 0 : i32
    %c0_i32_0 = arith.constant 0 : i32
    %c0_i32_1 = arith.constant 0 : i32
    return %c0_i32, %c0_i32_0 : i32, i32
  }
  func.func @transform_2(%arg0: i32) -> (i32, i32) {
    %c0_i32 = arith.constant 0 : i32
    %c0_i32_0 = arith.constant 0 : i32
    %c0_i32_1 = arith.constant 0 : i32
    return %c0_i32, %c0_i32_0 : i32, i32
  }
  func.func @transform_3(%arg0: i32) -> (i32, i32) {
    %c0_i32 = arith.constant 0 : i32
    %c0_i32_0 = arith.constant 0 : i32
    %c0_i32_1 = arith.constant 0 : i32
    return %c0_i32, %c0_i32_0 : i32, i32
  }
  func.func @transform_4(%arg0: i32) -> (i32, i32) {
    %c0_i32 = arith.constant 0 : i32
    %c0_i32_0 = arith.constant 0 : i32
    %c0_i32_1 = arith.constant 0 : i32
    return %c0_i32, %c0_i32_0 : i32, i32
  }
  func.func @transform_5(%arg0: i32) -> (i32, i32) {
    %c0_i32 = arith.constant 0 : i32
    %c0_i32_0 = arith.constant 0 : i32
    %c0_i32_1 = arith.constant 0 : i32
    return %c0_i32, %c0_i32_0 : i32, i32
  }
  func.func @transform_6(%arg0: i32) -> (i32, i32) {
    %c0_i32 = arith.constant 0 : i32
    %c0_i32_0 = arith.constant 0 : i32
    %c0_i32_1 = arith.constant 0 : i32
    return %c0_i32, %c0_i32_0 : i32, i32
  }
  func.func @transform_7(%arg0: i32) -> (i32, i32) {
    %c0_i32 = arith.constant 0 : i32
    %c0_i32_0 = arith.constant 0 : i32
    %c0_i32_1 = arith.constant 0 : i32
    return %c0_i32, %c0_i32_0 : i32, i32
  }
  func.func @transform_8(%arg0: i32) -> (i32, i32) {
    %c0_i32 = arith.constant 0 : i32
    %c0_i32_0 = arith.constant 0 : i32
    %c0_i32_1 = arith.constant 0 : i32
    return %c0_i32, %c0_i32_0 : i32, i32
  }
  func.func @transform_9(%arg0: i32) -> (i32, i32) {
    %c0_i32 = arith.constant 0 : i32
    %c0_i32_0 = arith.constant 0 : i32
    %c0_i32_1 = arith.constant 0 : i32
    return %c0_i32, %c0_i32_0 : i32, i32
  }
  func.func @transform_10(%arg0: i32) -> (i32, i32) {
    %c0_i32 = arith.constant 0 : i32
    %c0_i32_0 = arith.constant 0 : i32
    %c0_i32_1 = arith.constant 0 : i32
    return %c0_i32, %c0_i32_0 : i32, i32
  }
  func.func @transform_11(%arg0: i32) -> (i32, i32) {
    %c0_i32 = arith.constant 0 : i32
    %c0_i32_0 = arith.constant 0 : i32
    return %arg0, %c0_i32 : i32, i32
  }
}

module attributes {stable_mosaic.version = 11 : i64} {
  func.func @_autoencoder_kernel(%arg0: i32, %arg1: memref<8x128xf32, #tpu.memory_space<vmem>>, %arg2: memref<128x512xbf16, #tpu.memory_space<vmem>>, %arg3: memref<1x512xf32, #tpu.memory_space<vmem>>, %arg4: memref<512x256xbf16, #tpu.memory_space<vmem>>, %arg5: memref<1x256xf32, #tpu.memory_space<vmem>>, %arg6: memref<256x256xbf16, #tpu.memory_space<vmem>>, %arg7: memref<1x256xf32, #tpu.memory_space<vmem>>, %arg8: memref<256x512xbf16, #tpu.memory_space<vmem>>, %arg9: memref<1x512xf32, #tpu.memory_space<vmem>>, %arg10: memref<512x128xbf16, #tpu.memory_space<vmem>>, %arg11: memref<1x128xf32, #tpu.memory_space<vmem>>, %arg12: memref<8x128xf32, #tpu.memory_space<vmem>>) attributes {dimension_semantics = [#tpu.dimension_semantics<parallel>], iteration_bounds = array<i64: 1>, scalar_prefetch = 0 : i64, scratch_operands = 0 : i64, tpu.core_type = #tpu.core_type<tc>, window_params = [{transform_indices = @transform_0, window_bounds = array<i64: 8, 128>}, {pipeline_mode = #tpu.pipeline_mode<synchronous>, transform_indices = @transform_1, window_bounds = array<i64: 128, 512>}, {pipeline_mode = #tpu.pipeline_mode<synchronous>, transform_indices = @transform_2, window_bounds = array<i64: 1, 512>}, {pipeline_mode = #tpu.pipeline_mode<synchronous>, transform_indices = @transform_3, window_bounds = array<i64: 512, 256>}, {pipeline_mode = #tpu.pipeline_mode<synchronous>, transform_indices = @transform_4, window_bounds = array<i64: 1, 256>}, {pipeline_mode = #tpu.pipeline_mode<synchronous>, transform_indices = @transform_5, window_bounds = array<i64: 256, 256>}, {pipeline_mode = #tpu.pipeline_mode<synchronous>, transform_indices = @transform_6, window_bounds = array<i64: 1, 256>}, {pipeline_mode = #tpu.pipeline_mode<synchronous>, transform_indices = @transform_7, window_bounds = array<i64: 256, 512>}, {pipeline_mode = #tpu.pipeline_mode<synchronous>, transform_indices = @transform_8, window_bounds = array<i64: 1, 512>}, {pipeline_mode = #tpu.pipeline_mode<synchronous>, transform_indices = @transform_9, window_bounds = array<i64: 512, 128>}, {pipeline_mode = #tpu.pipeline_mode<synchronous>, transform_indices = @transform_10, window_bounds = array<i64: 1, 128>}, {transform_indices = @transform_11, window_bounds = array<i64: 8, 128>}]} {
    %c0 = arith.constant 0 : index
    %c0_0 = arith.constant 0 : index
    %0 = vector.load %arg1[%c0, %c0_0] : memref<8x128xf32, #tpu.memory_space<vmem>>, vector<8x128xf32>
    %1 = arith.truncf %0 : vector<8x128xf32> to vector<8x128xbf16>
    %c0_1 = arith.constant 0 : index
    %c0_2 = arith.constant 0 : index
    %2 = vector.load %arg2[%c0_1, %c0_2] : memref<128x512xbf16, #tpu.memory_space<vmem>>, vector<128x512xbf16>
    %cst = arith.constant dense<0.000000e+00> : vector<8x512xf32>
    %3 = tpu.matmul %1, %2, %cst {dimension_numbers = #tpu.dot_dimension_numbers<[1], [0], [0], [1], [0, 0, 1, 1], [], []>} : vector<8x128xbf16>, vector<128x512xbf16>, vector<8x512xf32> -> vector<8x512xf32>
    %c0_3 = arith.constant 0 : index
    %c0_4 = arith.constant 0 : index
    %4 = vector.load %arg3[%c0_3, %c0_4] : memref<1x512xf32, #tpu.memory_space<vmem>>, vector<1x512xf32>
    %5 = vector.broadcast %4 : vector<1x512xf32> to vector<8x512xf32>
    %6 = arith.addf %3, %5 : vector<8x512xf32>
    %cst_5 = arith.constant 0.000000e+00 : f32
    %7 = vector.broadcast %cst_5 : f32 to vector<8x512xf32>
    %8 = arith.maximumf %6, %7 : vector<8x512xf32>
    %9 = arith.truncf %8 : vector<8x512xf32> to vector<8x512xbf16>
    %c0_6 = arith.constant 0 : index
    %c0_7 = arith.constant 0 : index
    %10 = vector.load %arg4[%c0_6, %c0_7] : memref<512x256xbf16, #tpu.memory_space<vmem>>, vector<512x256xbf16>
    %cst_8 = arith.constant dense<0.000000e+00> : vector<8x256xf32>
    %11 = tpu.matmul %9, %10, %cst_8 {dimension_numbers = #tpu.dot_dimension_numbers<[1], [0], [0], [1], [0, 0, 1, 1], [], []>} : vector<8x512xbf16>, vector<512x256xbf16>, vector<8x256xf32> -> vector<8x256xf32>
    %c0_9 = arith.constant 0 : index
    %c0_10 = arith.constant 0 : index
    %12 = vector.load %arg5[%c0_9, %c0_10] : memref<1x256xf32, #tpu.memory_space<vmem>>, vector<1x256xf32>
    %13 = vector.broadcast %12 : vector<1x256xf32> to vector<8x256xf32>
    %14 = arith.addf %11, %13 : vector<8x256xf32>
    %cst_11 = arith.constant 0.000000e+00 : f32
    %15 = vector.broadcast %cst_11 : f32 to vector<8x256xf32>
    %16 = arith.maximumf %14, %15 : vector<8x256xf32>
    %17 = arith.truncf %16 : vector<8x256xf32> to vector<8x256xbf16>
    %c0_12 = arith.constant 0 : index
    %c0_13 = arith.constant 0 : index
    %18 = vector.load %arg6[%c0_12, %c0_13] : memref<256x256xbf16, #tpu.memory_space<vmem>>, vector<256x256xbf16>
    %cst_14 = arith.constant dense<0.000000e+00> : vector<8x256xf32>
    %19 = tpu.matmul %17, %18, %cst_14 {dimension_numbers = #tpu.dot_dimension_numbers<[1], [0], [0], [1], [0, 0, 1, 1], [], []>} : vector<8x256xbf16>, vector<256x256xbf16>, vector<8x256xf32> -> vector<8x256xf32>
    %c0_15 = arith.constant 0 : index
    %c0_16 = arith.constant 0 : index
    %20 = vector.load %arg7[%c0_15, %c0_16] : memref<1x256xf32, #tpu.memory_space<vmem>>, vector<1x256xf32>
    %21 = vector.broadcast %20 : vector<1x256xf32> to vector<8x256xf32>
    %22 = arith.addf %19, %21 : vector<8x256xf32>
    %cst_17 = arith.constant 0.000000e+00 : f32
    %23 = vector.broadcast %cst_17 : f32 to vector<8x256xf32>
    %24 = arith.maximumf %22, %23 : vector<8x256xf32>
    %25 = arith.truncf %24 : vector<8x256xf32> to vector<8x256xbf16>
    %c0_18 = arith.constant 0 : index
    %c0_19 = arith.constant 0 : index
    %26 = vector.load %arg8[%c0_18, %c0_19] : memref<256x512xbf16, #tpu.memory_space<vmem>>, vector<256x512xbf16>
    %cst_20 = arith.constant dense<0.000000e+00> : vector<8x512xf32>
    %27 = tpu.matmul %25, %26, %cst_20 {dimension_numbers = #tpu.dot_dimension_numbers<[1], [0], [0], [1], [0, 0, 1, 1], [], []>} : vector<8x256xbf16>, vector<256x512xbf16>, vector<8x512xf32> -> vector<8x512xf32>
    %c0_21 = arith.constant 0 : index
    %c0_22 = arith.constant 0 : index
    %28 = vector.load %arg9[%c0_21, %c0_22] : memref<1x512xf32, #tpu.memory_space<vmem>>, vector<1x512xf32>
    %29 = vector.broadcast %28 : vector<1x512xf32> to vector<8x512xf32>
    %30 = arith.addf %27, %29 : vector<8x512xf32>
    %cst_23 = arith.constant 0.000000e+00 : f32
    %31 = vector.broadcast %cst_23 : f32 to vector<8x512xf32>
    %32 = arith.maximumf %30, %31 : vector<8x512xf32>
    %33 = arith.truncf %32 : vector<8x512xf32> to vector<8x512xbf16>
    %c0_24 = arith.constant 0 : index
    %c0_25 = arith.constant 0 : index
    %34 = vector.load %arg10[%c0_24, %c0_25] : memref<512x128xbf16, #tpu.memory_space<vmem>>, vector<512x128xbf16>
    %cst_26 = arith.constant dense<0.000000e+00> : vector<8x128xf32>
    %35 = tpu.matmul %33, %34, %cst_26 {dimension_numbers = #tpu.dot_dimension_numbers<[1], [0], [0], [1], [0, 0, 1, 1], [], []>} : vector<8x512xbf16>, vector<512x128xbf16>, vector<8x128xf32> -> vector<8x128xf32>
    %c0_27 = arith.constant 0 : index
    %c0_28 = arith.constant 0 : index
    %36 = vector.load %arg11[%c0_27, %c0_28] : memref<1x128xf32, #tpu.memory_space<vmem>>, vector<1x128xf32>
    %37 = vector.broadcast %36 : vector<1x128xf32> to vector<8x128xf32>
    %38 = arith.addf %35, %37 : vector<8x128xf32>
    %c0_29 = arith.constant 0 : index
    %c0_30 = arith.constant 0 : index
    %39 = vector.load %arg12[%c0_29, %c0_30] : memref<8x128xf32, #tpu.memory_space<vmem>>, vector<8x128xf32>
    tpu.vector_store %arg12[%c0_29, %c0_30], %38 {strides = array<i32>} : memref<8x128xf32, #tpu.memory_space<vmem>>, vector<8x128xf32>,
    return
  }
  func.func @transform_0(%arg0: i32) -> (i32, i32) {
    %c0_i32 = arith.constant 0 : i32
    %c0_i32_0 = arith.constant 0 : i32
    return %arg0, %c0_i32 : i32, i32
  }
  func.func @transform_1(%arg0: i32) -> (i32, i32) {
    %c0_i32 = arith.constant 0 : i32
    %c0_i32_0 = arith.constant 0 : i32
    %c0_i32_1 = arith.constant 0 : i32
    return %c0_i32, %c0_i32_0 : i32, i32
  }
  func.func @transform_2(%arg0: i32) -> (i32, i32) {
    %c0_i32 = arith.constant 0 : i32
    %c0_i32_0 = arith.constant 0 : i32
    %c0_i32_1 = arith.constant 0 : i32
    return %c0_i32, %c0_i32_0 : i32, i32
  }
  func.func @transform_3(%arg0: i32) -> (i32, i32) {
    %c0_i32 = arith.constant 0 : i32
    %c0_i32_0 = arith.constant 0 : i32
    %c0_i32_1 = arith.constant 0 : i32
    return %c0_i32, %c0_i32_0 : i32, i32
  }
  func.func @transform_4(%arg0: i32) -> (i32, i32) {
    %c0_i32 = arith.constant 0 : i32
    %c0_i32_0 = arith.constant 0 : i32
    %c0_i32_1 = arith.constant 0 : i32
    return %c0_i32, %c0_i32_0 : i32, i32
  }
  func.func @transform_5(%arg0: i32) -> (i32, i32) {
    %c0_i32 = arith.constant 0 : i32
    %c0_i32_0 = arith.constant 0 : i32
    %c0_i32_1 = arith.constant 0 : i32
    return %c0_i32, %c0_i32_0 : i32, i32
  }
  func.func @transform_6(%arg0: i32) -> (i32, i32) {
    %c0_i32 = arith.constant 0 : i32
    %c0_i32_0 = arith.constant 0 : i32
    %c0_i32_1 = arith.constant 0 : i32
    return %c0_i32, %c0_i32_0 : i32, i32
  }
  func.func @transform_7(%arg0: i32) -> (i32, i32) {
    %c0_i32 = arith.constant 0 : i32
    %c0_i32_0 = arith.constant 0 : i32
    %c0_i32_1 = arith.constant 0 : i32
    return %c0_i32, %c0_i32_0 : i32, i32
  }
  func.func @transform_8(%arg0: i32) -> (i32, i32) {
    %c0_i32 = arith.constant 0 : i32
    %c0_i32_0 = arith.constant 0 : i32
    %c0_i32_1 = arith.constant 0 : i32
    return %c0_i32, %c0_i32_0 : i32, i32
  }
  func.func @transform_9(%arg0: i32) -> (i32, i32) {
    %c0_i32 = arith.constant 0 : i32
    %c0_i32_0 = arith.constant 0 : i32
    %c0_i32_1 = arith.constant 0 : i32
    return %c0_i32, %c0_i32_0 : i32, i32
  }
  func.func @transform_10(%arg0: i32) -> (i32, i32) {
    %c0_i32 = arith.constant 0 : i32
    %c0_i32_0 = arith.constant 0 : i32
    %c0_i32_1 = arith.constant 0 : i32
    return %c0_i32, %c0_i32_0 : i32, i32
  }
  func.func @transform_11(%arg0: i32) -> (i32, i32) {
    %c0_i32 = arith.constant 0 : i32
    %c0_i32_0 = arith.constant 0 : i32
    return %arg0, %c0_i32 : i32, i32
  }
}

</mosaic_0001>

<bundles_post_ra>
// kernel: _forward.1
= control target key start
LH: loop header
LB: loop body
LE: loop exit
PB: predicated region body
PF: predicated region fallthrough
CT: control target
= control target key end

     0   :  { %16 = vsyncpa [#allocation3], 0  ;;  %s2873_s0 = inlined_call_operand.vmem [shape: f32[8,128], index: 0, kind: input, shape index: {}]   ;;  %s2874_s1 = inlined_call_operand.hbm [shape: bf16[128,512], index: 1, kind: input, shape index: {}]   ;;  %s2875_s2 = inlined_call_operand.vmem [shape: f32[1,512], index: 2, kind: input, shape index: {}]   ;;  %s2876_s3 = inlined_call_operand.hbm [shape: bf16[512,256], index: 3, kind: input, shape index: {}]   ;;  %s2877_s4 = inlined_call_operand.vmem [shape: f32[1,256], index: 4, kind: input, shape index: {}]   ;;  %s2878_s5 = inlined_call_operand.hbm [shape: bf16[256,256], index: 5, kind: input, shape index: {}]   ;;  %s2879_s6 = inlined_call_operand.vmem [shape: f32[1,256], index: 6, kind: input, shape index: {}]   ;;  %s2880_s7 = inlined_call_operand.hbm [shape: bf16[256,512], index: 7, kind: input, shape index: {}]   ;;  %s2881_s8 = inlined_call_operand.vmem [shape: f32[1,512], index: 8, kind: input, shape index: {}]   ;;  %s2882_s9 = inlined_call_operand.hbm [shape: bf16[512,128], index: 9, kind: input, shape index: {}]   ;;  %s2883_s10 = inlined_call_operand.vmem [shape: f32[1,128], index: 10, kind: input, shape index: {}]   ;;  %s2884_s11 = inlined_call_operand.hbm [shape: f32[8,128], index: 11, kind: output, shape index: {}]  }
   0x1   :  { %17 = vsyncpa [#allocation6], 0 }
   0x2   :  { %18 = vsyncpa [#allocation9], 0 }
   0x3   :  { %19 = vsyncpa [#allocation4], 0  ;;  %s2732_s17 = smov [#allocation5]  }
   0x4   :  { %s41_s18 = sshll.u32 %s2732_s17, 4  ;;  %s42_s18 = int_to_ptr.vmem [resolvable:$true] %s41_s18 }
   0x5   :  { %s2612_s19 = scalar_lea.vmem %s42_s18, 8192  ;;  %p2617_p1 = scmp.lt.s32.totalorder %s42_s18, %s42_s18 }
   0x6   :  { %p2613_p0 = scmp.ne.s32.totalorder %s42_s18, %s2612_s19  ;;  %p2618_p2 = scmp.lt.s32.totalorder %s2612_s19, %s2612_s19 }
   0x8   :  { %p2619_p3 = por %p2618_p2, %p2617_p1 }
   0xa   :  { %p2620_p4 = pnand %p2619_p3, %p2613_p0 }
   0xc   :  { %2623 = shalt.err (!%p2620_p4)
}
   0xd   :  { %s2733_s20 = smov 128   ;;  %s2734_s21 = smov 8  }
   0xe   :  { %47 = dma.hbm_to_vmem [thread:$0]  %s2876_s3, 8192, %s42_s18, [#allocation6], %s2733_s20, %s2733_s20, %s2734_s21  }
   0xf   :  { %s2735_s24 = smov [#allocation8]   ;;  %s2736_s26 = smov [#allocation2]  }
  0x10   :  { %s69_s25 = sshll.u32 %s2735_s24, 4  ;;  %s27_s27 = sshll.u32 %s2736_s26, 4  ;;  %s70_s25 = int_to_ptr.vmem [resolvable:$true] %s69_s25  ;;  %s28_s27 = int_to_ptr.vmem [resolvable:$true] %s27_s27 }
  0x11   :  { %s2632_s28 = scalar_lea.vmem %s70_s25, 8192  ;;  %p2637_p6 = scmp.lt.s32.totalorder %s70_s25, %s70_s25 }
  0x12   :  { %p2633_p5 = scmp.ne.s32.totalorder %s70_s25, %s2632_s28  ;;  %p2638_p7 = scmp.lt.s32.totalorder %s2632_s28, %s2632_s28 }
  0x14   :  { %p2639_p8 = por %p2638_p7, %p2637_p6 }
  0x16   :  { %p2640_p9 = pnand %p2639_p8, %p2633_p5 }
  0x18   :  { %2643 = shalt.err (!%p2640_p9)
}
  0x19   :  { %s2737_s29 = smov 256   ;;  %s2738_s30 = smov 16  }
  0x1a   :  { %75 = dma.hbm_to_vmem [thread:$0]  %s2880_s7, 8192, %s70_s25, [#allocation9], %s2737_s29, %s2737_s29, %s2738_s30  }
  0x1b   :  { %s2652_s3 = scalar_lea.vmem %s28_s27, 4096  ;;  %p2657_p11 = scmp.lt.s32.totalorder %s28_s27, %s28_s27 }
  0x1c   :  { %p2653_p10 = scmp.ne.s32.totalorder %s28_s27, %s2652_s3  ;;  %p2658_p12 = scmp.lt.s32.totalorder %s2652_s3, %s2652_s3 }
  0x1e   :  { %p2659_p13 = por %p2658_p12, %p2657_p11 }
  0x20   :  { %p2660_p0 = pnand %p2659_p13, %p2653_p10 }
  0x22   :  { %2663 = shalt.err (!%p2660_p0)
}
  0x23   :  { %33 = dma.hbm_to_vmem [thread:$0]  %s2874_s1, 4096, %s28_s27, [#allocation3], %s2737_s29, %s2737_s29, %s2738_s30  }
  0x24   :  { %s2739_s16 = smov [#allocation7]   ;;  %s2740_s18 = smov [#allocation10]  }
  0x25   :  { %s55_s17 = sshll.u32 %s2739_s16, 4  ;;  %s83_s19 = sshll.u32 %s2740_s18, 4  ;;  %s56_s17 = int_to_ptr.vmem [resolvable:$true] %s55_s17  ;;  %s84_s19 = int_to_ptr.vmem [resolvable:$true] %s83_s19 }
  0x26   :  { %s2672_s22 = scalar_lea.vmem %s56_s17, 4096  ;;  %p2677_p2 = scmp.lt.s32.totalorder %s56_s17, %s56_s17 }
  0x27   :  { %p2673_p1 = scmp.ne.s32.totalorder %s56_s17, %s2672_s22  ;;  %p2678_p3 = scmp.lt.s32.totalorder %s2672_s22, %s2672_s22 }
  0x29   :  { %p2679_p4 = por %p2678_p3, %p2677_p2 }
  0x2b   :  { %p2680_p5 = pnand %p2679_p4, %p2673_p1 }
  0x2d   :  { %2683 = shalt.err (!%p2680_p5)
}
  0x2e   :  { %61 = dma.hbm_to_vmem [thread:$0]  %s2878_s5, 4096, %s56_s17, [#allocation6], %s2733_s20, %s2733_s20, %s2734_s21  }
  0x2f   :  { %s2692_s1 = scalar_lea.vmem %s84_s19, 4096  ;;  %p2697_p7 = scmp.lt.s32.totalorder %s84_s19, %s84_s19 }
  0x30   :  { %p2693_p6 = scmp.ne.s32.totalorder %s84_s19, %s2692_s1  ;;  %p2698_p8 = scmp.lt.s32.totalorder %s2692_s1, %s2692_s1 }
  0x32   :  { %p2699_p9 = por %p2698_p8, %p2697_p7 }
  0x34   :  { %p2700_p10 = pnand %p2699_p9, %p2693_p6 }
  0x36   :  { %2703 = shalt.err (!%p2700_p10)
}
  0x37   :  { %s2741_s24 = smov 64   ;;  %s2742_s25 = smov 4  }
  0x38   :  { %89 = dma.hbm_to_vmem [thread:$0]  %s2882_s9, 4096, %s84_s19, [#allocation9], %s2741_s24, %s2741_s24, %s2742_s25  }
  0x39   :  { %2724 = dma.done.wait [#allocation3], 4096  }
  0x3a   :  { %2725 = vsyncadd [#allocation3], 4294963200 }
  0x3b   :  { %2726 = dma.done.wait [#allocation6], 12288  }
  0x3c   :  { %2727 = vsyncadd [#allocation6], 4294955008 }
  0x3d   :  { %2728 = dma.done.wait [#allocation9], 12288  }
  0x3e   :  { %2729 = vsyncadd [#allocation9], 4294955008  ;;  %v2743_v0 = vmov 0   ;;  %v2284_v1 = vld [vmem:[#allocation2 + $0xe4] ss:$16 sps:$4 sm:$0xff]   ;;  %s2744_s12 = smov [#allocation11]  }
  0x3f   :  { %356 = vmatprep.mubr.bf16.mxu0 %v2743_v0  ;;  %397 = vmatprep.mubr.bf16.mxu1 %v2743_v0  ;;  %v2286_v2 = vld [vmem:[#allocation2 + $0xec] ss:$16 sps:$4 sm:$0xff]   ;;  %v2288_v3 = vld [vmem:[#allocation2 + $0xe0] ss:$16 sps:$4 sm:$0xff]   ;;  %v2289_v4 = vld [vmem:[#allocation2 + $0xe8] ss:$16 sps:$4 sm:$0xff]  }
  0x40   :  { %324 = vmatprep.subr.bf16.mxu0 %v2284_v1  ;;  %365 = vmatprep.subr.bf16.mxu1 %v2286_v2  ;;  %v2290_v5 = vld [vmem:[#allocation2 + $0xc4] ss:$16 sps:$4 sm:$0xff]   ;;  %v2292_v6 = vld [vmem:[#allocation2 + $0xcc] ss:$16 sps:$4 sm:$0xff]   ;;  %v2294_v7 = vld [vmem:[#allocation2 + $0xc0] ss:$16 sps:$4 sm:$0xff]  }
  0x41   :  { %325 = vmatpush1.bf16.msra.mxu0 %v2288_v3  ;;  %366 = vmatpush1.bf16.msra.mxu1 %v2289_v4  ;;  %v2295_v8 = vld [vmem:[#allocation2 + $0xc8] ss:$16 sps:$4 sm:$0xff]   ;;  %v2296_v9 = vld [vmem:[#allocation2 + $0xa4] ss:$16 sps:$4 sm:$0xff]   ;;  %v2298_v10 = vld [vmem:[#allocation2 + $0xac] ss:$16 sps:$4 sm:$0xff]  }
  0x42   :  { %326 = vmatprep.subr.bf16.mxu0 %v2290_v5  ;;  %367 = vmatprep.subr.bf16.mxu1 %v2292_v6  ;;  %v2300_v11 = vld [vmem:[#allocation2 + $0xa0] ss:$16 sps:$4 sm:$0xff]   ;;  %v2301_v12 = vld [vmem:[#allocation2 + $0xa8] ss:$16 sps:$4 sm:$0xff]   ;;  %v2302_v13 = vld [vmem:[#allocation2 + $0x84] ss:$16 sps:$4 sm:$0xff]  }
  0x43   :  { %v2304_v14 = vld [vmem:[#allocation2 + $0x8c] ss:$16 sps:$4 sm:$0xff]   ;;  %v2306_v15 = vld [vmem:[#allocation2 + $0x80] ss:$16 sps:$4 sm:$0xff]   ;;  %v2307_v16 = vld [vmem:[#allocation2 + $0x88] ss:$16 sps:$4 sm:$0xff]  }
  0x44   :  { %v2308_v17 = vld [vmem:[#allocation2 + $0x64] ss:$16 sps:$4 sm:$0xff]   ;;  %v2310_v18 = vld [vmem:[#allocation2 + $0x6c] ss:$16 sps:$4 sm:$0xff]   ;;  %v2312_v19 = vld [vmem:[#allocation2 + $0x60] ss:$16 sps:$4 sm:$0xff]  }
  0x45   :  { %327 = vmatpush1.bf16.msra.mxu0 %v2294_v7  ;;  %368 = vmatpush1.bf16.msra.mxu1 %v2295_v8  ;;  %v2313_v20 = vld [vmem:[#allocation2 + $0x68] ss:$16 sps:$4 sm:$0xff]   ;;  %v2314_v21 = vld [vmem:[#allocation2 + $0x44] ss:$16 sps:$4 sm:$0xff]   ;;  %v2316_v22 = vld [vmem:[#allocation2 + $0x4c] ss:$16 sps:$4 sm:$0xff]  }
  0x46   :  { %328 = vmatprep.subr.bf16.mxu0 %v2296_v9  ;;  %369 = vmatprep.subr.bf16.mxu1 %v2298_v10  ;;  %v2318_v23 = vld [vmem:[#allocation2 + $0x40] ss:$16 sps:$4 sm:$0xff]   ;;  %v2319_v24 = vld [vmem:[#allocation2 + $0x48] ss:$16 sps:$4 sm:$0xff]   ;;  %v2320_v25 = vld [vmem:[#allocation2 + $0x24] ss:$16 sps:$4 sm:$0xff]  }
  0x47   :  { %v2322_v26 = vld [vmem:[#allocation2 + $0x2c] ss:$16 sps:$4 sm:$0xff]   ;;  %v2324_v27 = vld [vmem:[#allocation2 + $0x20] ss:$16 sps:$4 sm:$0xff]   ;;  %v2325_v28 = vld [vmem:[#allocation2 + $0x28] ss:$16 sps:$4 sm:$0xff]  }
  0x48   :  { %v2326_v29 = vld [vmem:[#allocation2 + $0x4] ss:$16 sps:$4 sm:$0xff]   ;;  %v2328_v30 = vld [vmem:[#allocation2 + $0xc] ss:$16 sps:$4 sm:$0xff]   ;;  %v2330_v31 = vld [vmem:[#allocation2] ss:$16 sps:$4 sm:$0xff]  }
  0x49   :  { %329 = vmatpush1.bf16.msra.mxu0 %v2300_v11  ;;  %370 = vmatpush1.bf16.msra.mxu1 %v2301_v12  ;;  %v2331_v32 = vld [vmem:[#allocation2 + $0x8] ss:$16 sps:$4 sm:$0xff]   ;;  %v108_v33 = vld [vmem:[%s2873_s0] sm:$0xff]  ;;  %v2334_v34 = vld [vmem:[#allocation5 + $0x74] ss:$8 sps:$4 sm:$0xff]   ;;  %s1991_s13 = sshll.u32 %s2744_s12, 4  ;;  %s1992_s13 = int_to_ptr.vmem [resolvable:$true] %s1991_s13 }
  0x4a   :  { %330 = vmatprep.subr.bf16.mxu0 %v2302_v13  ;;  %371 = vmatprep.subr.bf16.mxu1 %v2304_v14  ;;  %v2337_v35 = vld [vmem:[#allocation5 + $0x174] ss:$8 sps:$4 sm:$0xff]   ;;  %v109_v36 = vpack.c.bf16 %v108_v33, %v108_v33  ;;  %v2332_v37 = vld [vmem:[#allocation5 + $0x70] ss:$8 sps:$4 sm:$0xff]   ;;  %v2340_v39 = vld [vmem:[#allocation5 + $0x64] ss:$8 sps:$4 sm:$0xff]   ;;  %p2709_p12 = scmp.lt.s32.totalorder %s1992_s13, %s1992_s13 }
  0x4b   :  { %v2335_v38 = vld [vmem:[#allocation5 + $0x170] ss:$8 sps:$4 sm:$0xff]   ;;  %v2343_v40 = vld [vmem:[#allocation5 + $0x164] ss:$8 sps:$4 sm:$0xff]   ;;  %v2338_v41 = vld [vmem:[#allocation5 + $0x60] ss:$8 sps:$4 sm:$0xff]  }
  0x4c   :  { %v2341_v42 = vld [vmem:[#allocation5 + $0x160] ss:$8 sps:$4 sm:$0xff]   ;;  %v2346_v43 = vld [vmem:[#allocation5 + $0x54] ss:$8 sps:$4 sm:$0xff]   ;;  %v2344_v45 = vld [vmem:[#allocation5 + $0x50] ss:$8 sps:$4 sm:$0xff]  }
  0x4d   :  { %331 = vmatpush1.bf16.msra.mxu0 %v2306_v15  ;;  %372 = vmatpush1.bf16.msra.mxu1 %v2307_v16  ;;  %v2349_v44 = vld [vmem:[#allocation5 + $0x154] ss:$8 sps:$4 sm:$0xff]   ;;  %v2347_v46 = vld [vmem:[#allocation5 + $0x150] ss:$8 sps:$4 sm:$0xff]   ;;  %v2352_v47 = vld [vmem:[#allocation5 + $0x44] ss:$8 sps:$4 sm:$0xff]  }
  0x4e   :  { %332 = vmatprep.subr.bf16.mxu0 %v2308_v17  ;;  %373 = vmatprep.subr.bf16.mxu1 %v2310_v18  ;;  %v2355_v48 = vld [vmem:[#allocation5 + $0x144] ss:$8 sps:$4 sm:$0xff]   ;;  %v2350_v49 = vld [vmem:[#allocation5 + $0x40] ss:$8 sps:$4 sm:$0xff]   ;;  %v2358_v51 = vld [vmem:[#allocation5 + $0x34] ss:$8 sps:$4 sm:$0xff]  }
  0x4f   :  { %v2353_v50 = vld [vmem:[#allocation5 + $0x140] ss:$8 sps:$4 sm:$0xff]   ;;  %v2361_v52 = vld [vmem:[#allocation5 + $0x134] ss:$8 sps:$4 sm:$0xff]   ;;  %v2356_v53 = vld [vmem:[#allocation5 + $0x30] ss:$8 sps:$4 sm:$0xff]  }
  0x50   :  { %v2359_v54 = vld [vmem:[#allocation5 + $0x130] ss:$8 sps:$4 sm:$0xff]   ;;  %v2364_v55 = vld [vmem:[#allocation5 + $0x24] ss:$8 sps:$4 sm:$0xff]   ;;  %v2362_v57 = vld [vmem:[#allocation5 + $0x20] ss:$8 sps:$4 sm:$0xff]  }
  0x51   :  { %333 = vmatpush1.bf16.msra.mxu0 %v2312_v19  ;;  %374 = vmatpush1.bf16.msra.mxu1 %v2313_v20  ;;  %v2367_v56 = vld [vmem:[#allocation5 + $0x124] ss:$8 sps:$4 sm:$0xff]   ;;  %v2365_v58 = vld [vmem:[#allocation5 + $0x120] ss:$8 sps:$4 sm:$0xff]   ;;  %v2370_v59 = vld [vmem:[#allocation5 + $0x14] ss:$8 sps:$4 sm:$0xff]  }
  0x52   :  { %334 = vmatprep.subr.bf16.mxu0 %v2314_v21  ;;  %375 = vmatprep.subr.bf16.mxu1 %v2316_v22  ;;  %v2373_v60 = vld [vmem:[#allocation5 + $0x114] ss:$8 sps:$4 sm:$0xff]   ;;  %v2368_v61 = vld [vmem:[#allocation5 + $0x10] ss:$8 sps:$4 sm:$0xff]   ;;  %v2376_v63 = vld [vmem:[#allocation5 + $0x4] ss:$8 sps:$4 sm:$0xff]  }
  0x53   :  { %v2371_v62 = vld [vmem:[#allocation5 + $0x110] ss:$8 sps:$4 sm:$0xff]   ;;  %v2379_v0 = vld [vmem:[#allocation5 + $0x104] ss:$8 sps:$4 sm:$0xff]   ;;  %v2374_v1 = vld [vmem:[#allocation5] ss:$8 sps:$4 sm:$0xff]  }
  0x54   :  { %v2377_v2 = vld [vmem:[#allocation5 + $0x100] ss:$8 sps:$4 sm:$0xff]   ;;  %v2382_v3 = vld [vmem:[#allocation5 + $0xf4] ss:$8 sps:$4 sm:$0xff]   ;;  %v2380_v5 = vld [vmem:[#allocation5 + $0xf0] ss:$8 sps:$4 sm:$0xff]  }
  0x55   :  { %335 = vmatpush1.bf16.msra.mxu0 %v2318_v23  ;;  %376 = vmatpush1.bf16.msra.mxu1 %v2319_v24  ;;  %v2385_v4 = vld [vmem:[#allocation5 + $0x1f4] ss:$8 sps:$4 sm:$0xff]   ;;  %v2383_v6 = vld [vmem:[#allocation5 + $0x1f0] ss:$8 sps:$4 sm:$0xff]   ;;  %v2388_v7 = vld [vmem:[#allocation5 + $0xe4] ss:$8 sps:$4 sm:$0xff]  }
  0x56   :  { %336 = vmatprep.subr.bf16.mxu0 %v2320_v25  ;;  %377 = vmatprep.subr.bf16.mxu1 %v2322_v26  ;;  %v2391_v8 = vld [vmem:[#allocation5 + $0x1e4] ss:$8 sps:$4 sm:$0xff]   ;;  %v2386_v9 = vld [vmem:[#allocation5 + $0xe0] ss:$8 sps:$4 sm:$0xff]   ;;  %v2394_v11 = vld [vmem:[#allocation5 + $0xd4] ss:$8 sps:$4 sm:$0xff]  }
  0x57   :  { %v2389_v10 = vld [vmem:[#allocation5 + $0x1e0] ss:$8 sps:$4 sm:$0xff]   ;;  %v2397_v12 = vld [vmem:[#allocation5 + $0x1d4] ss:$8 sps:$4 sm:$0xff]   ;;  %v2392_v13 = vld [vmem:[#allocation5 + $0xd0] ss:$8 sps:$4 sm:$0xff]  }
  0x58   :  { %v2395_v14 = vld [vmem:[#allocation5 + $0x1d0] ss:$8 sps:$4 sm:$0xff]   ;;  %v2400_v15 = vld [vmem:[#allocation5 + $0xc4] ss:$8 sps:$4 sm:$0xff]   ;;  %v2398_v17 = vld [vmem:[#allocation5 + $0xc0] ss:$8 sps:$4 sm:$0xff]  }
  0x59   :  { %337 = vmatpush1.bf16.msra.mxu0 %v2324_v27  ;;  %378 = vmatpush1.bf16.msra.mxu1 %v2325_v28  ;;  %v2403_v16 = vld [vmem:[#allocation5 + $0x1c4] ss:$8 sps:$4 sm:$0xff]   ;;  %v2401_v18 = vld [vmem:[#allocation5 + $0x1c0] ss:$8 sps:$4 sm:$0xff]   ;;  %v2406_v19 = vld [vmem:[#allocation5 + $0xb4] ss:$8 sps:$4 sm:$0xff]  }
  0x5a   :  { %338 = vmatprep.subr.bf16.mxu0 %v2326_v29  ;;  %379 = vmatprep.subr.bf16.mxu1 %v2328_v30  ;;  %v2409_v20 = vld [vmem:[#allocation5 + $0x1b4] ss:$8 sps:$4 sm:$0xff]   ;;  %v2404_v21 = vld [vmem:[#allocation5 + $0xb0] ss:$8 sps:$4 sm:$0xff]   ;;  %v2412_v23 = vld [vmem:[#allocation5 + $0xa4] ss:$8 sps:$4 sm:$0xff]  }
  0x5b   :  { %v2407_v22 = vld [vmem:[#allocation5 + $0x1b0] ss:$8 sps:$4 sm:$0xff]   ;;  %v2415_v24 = vld [vmem:[#allocation5 + $0x1a4] ss:$8 sps:$4 sm:$0xff]   ;;  %v2410_v25 = vld [vmem:[#allocation5 + $0xa0] ss:$8 sps:$4 sm:$0xff]  }
  0x5c   :  { %v2413_v26 = vld [vmem:[#allocation5 + $0x1a0] ss:$8 sps:$4 sm:$0xff]   ;;  %v2418_v27 = vld [vmem:[#allocation5 + $0x94] ss:$8 sps:$4 sm:$0xff]   ;;  %v2416_v29 = vld [vmem:[#allocation5 + $0x90] ss:$8 sps:$4 sm:$0xff]  }
  0x5d   :  { %339 = vmatpush1.bf16.msra.mxu0 %v2330_v31  ;;  %380 = vmatpush1.bf16.msra.mxu1 %v2331_v32  ;;  %v2421_v28 = vld [vmem:[#allocation5 + $0x194] ss:$8 sps:$4 sm:$0xff]   ;;  %v2419_v30 = vld [vmem:[#allocation5 + $0x190] ss:$8 sps:$4 sm:$0xff]   ;;  %v2424_v31 = vld [vmem:[#allocation5 + $0x84] ss:$8 sps:$4 sm:$0xff]  }
  0x5e   :  { %810 = vmatprep.subr.bf16.mxu0 %v2334_v34  ;;  %851 = vmatprep.subr.bf16.mxu1 %v2337_v35  ;;  %v2427_v32 = vld [vmem:[#allocation5 + $0x184] ss:$8 sps:$4 sm:$0xff]   ;;  %v2422_v33 = vld [vmem:[#allocation5 + $0x80] ss:$8 sps:$4 sm:$0xff]   ;;  %v2430_v35 = vld [vmem:[#allocation7 + $0x74] ss:$8 sps:$4 sm:$0xff]  }
  0x5f   :  { %v2425_v34 = vld [vmem:[#allocation5 + $0x180] ss:$8 sps:$4 sm:$0xff]   ;;  %s2704_s3 = scalar_lea.vmem %s1992_s13, 128 }
  0x60   :  { %357 = vmatmul.mubr.bf16.vlgmr.msra.gmra.mxu0 %v109_v36  ;;  %398 = vmatmul.mubr.bf16.vlgmr.msra.gmra.mxu1 %v109_v36  ;;  %v144_v36 = vlaneseq  ;;  %p2705_p11 = scmp.ne.s32.totalorder %s1992_s13, %s2704_s3  ;;  %p2710_p13 = scmp.lt.s32.totalorder %s2704_s3, %s2704_s3 }
  0x61   :  { %811 = vmatpush1.bf16.msra.mxu0 %v2332_v37  ;;  %852 = vmatpush1.bf16.msra.mxu1 %v2335_v38 }
  0x62   :  { %812 = vmatprep.subr.bf16.mxu0 %v2340_v39  ;;  %853 = vmatprep.subr.bf16.mxu1 %v2343_v40  ;;  %v2829_v37 = vshrl.u32 %v144_v36, 7  ;;  %v142_v40 = vld [vmem:[%s2875_s2] sm:$0xf]  ;;  %v2481_v36 = vld [vmem:[#allocation8 + $0xec] ss:$16 sps:$4 sm:$0xff]   ;;  %p2711_p0 = por %p2710_p13, %p2709_p12 }
  0x64   :  { %v2832_v38 = vsub.s32 0, %v2829_v37  ;;  %v154_v39 = vsub.s32 2, %v2829_v37  ;;  %p2712_p1 = pnand %p2711_p0, %p2705_p11 }
  0x65   :  { %813 = vmatpush1.bf16.msra.mxu0 %v2338_v41  ;;  %854 = vmatpush1.bf16.msra.mxu1 %v2341_v42  ;;  %v2839_v41 = vsub.s32 1, %v2829_v37  ;;  %v158_v42 = vsub.s32 3, %v2829_v37 }
  0x66   :  { %814 = vmatprep.subr.bf16.mxu0 %v2346_v43  ;;  %855 = vmatprep.subr.bf16.mxu1 %v2349_v44  ;;  %v147_v43 = vrot.slane %v142_v40, %v2832_v38  ;;  %v155_v44 = vrot.slane %v142_v40, %v154_v39 }
  0x69   :  { %815 = vmatpush1.bf16.msra.mxu0 %v2344_v45  ;;  %856 = vmatpush1.bf16.msra.mxu1 %v2347_v46  ;;  %v151_v45 = vrot.slane %v142_v40, %v2839_v41  ;;  %v159_v46 = vrot.slane %v142_v40, %v158_v42  ;;  %v2484_v40 = vld [vmem:[#allocation8 + $0xc4] ss:$16 sps:$4 sm:$0xff]  }
  0x6a   :  { %816 = vmatprep.subr.bf16.mxu0 %v2352_v47  ;;  %857 = vmatprep.subr.bf16.mxu1 %v2355_v48 }
  0x6d   :  { %817 = vmatpush1.bf16.msra.mxu0 %v2350_v49  ;;  %858 = vmatpush1.bf16.msra.mxu1 %v2353_v50 }
  0x6e   :  { %818 = vmatprep.subr.bf16.mxu0 %v2358_v51  ;;  %859 = vmatprep.subr.bf16.mxu1 %v2361_v52 }
  0x71   :  { %819 = vmatpush1.bf16.msra.mxu0 %v2356_v53  ;;  %860 = vmatpush1.bf16.msra.mxu1 %v2359_v54 }
  0x72   :  { %820 = vmatprep.subr.bf16.mxu0 %v2364_v55  ;;  %861 = vmatprep.subr.bf16.mxu1 %v2367_v56 }
  0x75   :  { %821 = vmatpush1.bf16.msra.mxu0 %v2362_v57  ;;  %862 = vmatpush1.bf16.msra.mxu1 %v2365_v58 }
  0x76   :  { %822 = vmatprep.subr.bf16.mxu0 %v2370_v59  ;;  %863 = vmatprep.subr.bf16.mxu1 %v2373_v60 }
  0x79   :  { %823 = vmatpush1.bf16.msra.mxu0 %v2368_v61  ;;  %864 = vmatpush1.bf16.msra.mxu1 %v2371_v62 }
  0x7a   :  { %824 = vmatprep.subr.bf16.mxu0 %v2376_v63  ;;  %865 = vmatprep.subr.bf16.mxu1 %v2379_v0 }
  0x7d   :  { %825 = vmatpush1.bf16.msra.mxu0 %v2374_v1  ;;  %866 = vmatpush1.bf16.msra.mxu1 %v2377_v2  ;;  %v2428_v2 = vld [vmem:[#allocation7 + $0x70] ss:$8 sps:$4 sm:$0xff]  }
  0x7e   :  { %826 = vmatprep.subr.bf16.mxu0 %v2382_v3  ;;  %867 = vmatprep.subr.bf16.mxu1 %v2385_v4  ;;  %v2433_v4 = vld [vmem:[#allocation7 + $0x64] ss:$8 sps:$4 sm:$0xff]  }
  0x81   :  { %827 = vmatpush2.bf16.msra.mxu0 %v2380_v5  ;;  %868 = vmatpush2.bf16.msra.mxu1 %v2383_v6  ;;  %v2431_v5 = vld [vmem:[#allocation7 + $0x60] ss:$8 sps:$4 sm:$0xff]   ;;  %v2436_v6 = vld [vmem:[#allocation7 + $0x54] ss:$8 sps:$4 sm:$0xff]  }
  0x82   :  { %828 = vmatprep.subr.bf16.mxu0 %v2388_v7  ;;  %869 = vmatprep.subr.bf16.mxu1 %v2391_v8  ;;  %v2434_v7 = vld [vmem:[#allocation7 + $0x50] ss:$8 sps:$4 sm:$0xff]   ;;  %v2439_v8 = vld [vmem:[#allocation7 + $0x44] ss:$8 sps:$4 sm:$0xff]  }
  0x85   :  { %829 = vmatpush2.bf16.msra.mxu0 %v2386_v9  ;;  %870 = vmatpush2.bf16.msra.mxu1 %v2389_v10  ;;  %v2437_v9 = vld [vmem:[#allocation7 + $0x40] ss:$8 sps:$4 sm:$0xff]   ;;  %v2442_v10 = vld [vmem:[#allocation7 + $0x34] ss:$8 sps:$4 sm:$0xff]  }
  0x86   :  { %830 = vmatprep.subr.bf16.mxu0 %v2394_v11  ;;  %871 = vmatprep.subr.bf16.mxu1 %v2397_v12  ;;  %v2440_v11 = vld [vmem:[#allocation7 + $0x30] ss:$8 sps:$4 sm:$0xff]   ;;  %v2445_v12 = vld [vmem:[#allocation7 + $0x24] ss:$8 sps:$4 sm:$0xff]  }
  0x89   :  { %831 = vmatpush2.bf16.msra.mxu0 %v2392_v13  ;;  %872 = vmatpush2.bf16.msra.mxu1 %v2395_v14  ;;  %v2443_v13 = vld [vmem:[#allocation7 + $0x20] ss:$8 sps:$4 sm:$0xff]   ;;  %v2448_v14 = vld [vmem:[#allocation7 + $0x14] ss:$8 sps:$4 sm:$0xff]  }
  0x8a   :  { %832 = vmatprep.subr.bf16.mxu0 %v2400_v15  ;;  %873 = vmatprep.subr.bf16.mxu1 %v2403_v16  ;;  %v2446_v15 = vld [vmem:[#allocation7 + $0x10] ss:$8 sps:$4 sm:$0xff]   ;;  %v2451_v16 = vld [vmem:[#allocation7 + $0x4] ss:$8 sps:$4 sm:$0xff]  }
  0x8d   :  { %833 = vmatpush2.bf16.msra.mxu0 %v2398_v17  ;;  %874 = vmatpush2.bf16.msra.mxu1 %v2401_v18  ;;  %v2449_v17 = vld [vmem:[#allocation7] ss:$8 sps:$4 sm:$0xff]   ;;  %v2454_v18 = vld [vmem:[#allocation7 + $0xf4] ss:$8 sps:$4 sm:$0xff]  }
  0x8e   :  { %834 = vmatprep.subr.bf16.mxu0 %v2406_v19  ;;  %875 = vmatprep.subr.bf16.mxu1 %v2409_v20  ;;  %v2452_v19 = vld [vmem:[#allocation7 + $0xf0] ss:$8 sps:$4 sm:$0xff]   ;;  %v2457_v20 = vld [vmem:[#allocation7 + $0xe4] ss:$8 sps:$4 sm:$0xff]  }
  0x91   :  { %835 = vmatpush2.bf16.msra.mxu0 %v2404_v21  ;;  %876 = vmatpush2.bf16.msra.mxu1 %v2407_v22  ;;  %v2455_v21 = vld [vmem:[#allocation7 + $0xe0] ss:$8 sps:$4 sm:$0xff]   ;;  %v2460_v22 = vld [vmem:[#allocation7 + $0xd4] ss:$8 sps:$4 sm:$0xff]  }
  0x92   :  { %836 = vmatprep.subr.bf16.mxu0 %v2412_v23  ;;  %877 = vmatprep.subr.bf16.mxu1 %v2415_v24  ;;  %v2458_v23 = vld [vmem:[#allocation7 + $0xd0] ss:$8 sps:$4 sm:$0xff]   ;;  %v2463_v24 = vld [vmem:[#allocation7 + $0xc4] ss:$8 sps:$4 sm:$0xff]  }
  0x95   :  { %837 = vmatpush2.bf16.msra.mxu0 %v2410_v25  ;;  %878 = vmatpush2.bf16.msra.mxu1 %v2413_v26  ;;  %v2461_v25 = vld [vmem:[#allocation7 + $0xc0] ss:$8 sps:$4 sm:$0xff]   ;;  %v2466_v26 = vld [vmem:[#allocation7 + $0xb4] ss:$8 sps:$4 sm:$0xff]  }
  0x96   :  { %838 = vmatprep.subr.bf16.mxu0 %v2418_v27  ;;  %879 = vmatprep.subr.bf16.mxu1 %v2421_v28  ;;  %v2464_v27 = vld [vmem:[#allocation7 + $0xb0] ss:$8 sps:$4 sm:$0xff]   ;;  %v2469_v28 = vld [vmem:[#allocation7 + $0xa4] ss:$8 sps:$4 sm:$0xff]  }
  0x99   :  { %839 = vmatpush2.bf16.msra.mxu0 %v2416_v29  ;;  %880 = vmatpush2.bf16.msra.mxu1 %v2419_v30  ;;  %v2467_v29 = vld [vmem:[#allocation7 + $0xa0] ss:$8 sps:$4 sm:$0xff]   ;;  %v2472_v30 = vld [vmem:[#allocation7 + $0x94] ss:$8 sps:$4 sm:$0xff]  }
  0x9a   :  { %840 = vmatprep.subr.bf16.mxu0 %v2424_v31  ;;  %881 = vmatprep.subr.bf16.mxu1 %v2427_v32  ;;  %v2470_v31 = vld [vmem:[#allocation7 + $0x90] ss:$8 sps:$4 sm:$0xff]   ;;  %v2475_v32 = vld [vmem:[#allocation7 + $0x84] ss:$8 sps:$4 sm:$0xff]  }
  0x9d   :  { %841 = vmatpush2.bf16.msra.mxu0 %v2422_v33  ;;  %882 = vmatpush2.bf16.msra.mxu1 %v2425_v34  ;;  %v2473_v33 = vld [vmem:[#allocation7 + $0x80] ss:$8 sps:$4 sm:$0xff]  }
  0x9e   :  { %1100 = vmatprep.subr.bf16.mxu0 %v2430_v35  ;;  %v2476_v34 = vld [vmem:[#allocation8 + $0xe0] ss:$16 sps:$4 sm:$0xff]   ;;  %v2478_v35 = vld [vmem:[#allocation8 + $0xe4] ss:$16 sps:$4 sm:$0xff]  }
  0x9f   :  { %1551 = vmatprep.subr.bf16.mxu1 %v2478_v35  ;;  %v2515_v35 = vld [vmem:[#allocation8 + $0x28] ss:$16 sps:$4 sm:$0xff]  }
 0x120   :  { %v358_v47 = vpop.f32.mrf.mxu0  ;;  %v399_v48 = vpop.f32.mrf.mxu1 }
 0x121   :  { %v359_v49 = vadd.f32 %v358_v47, %v147_v43  ;;  %v400_v50 = vadd.f32 %v399_v48, %v155_v44  ;;  %v2482_v43 = vld [vmem:[#allocation8 + $0xc0] ss:$16 sps:$4 sm:$0xff]   ;;  %v2490_v44 = vld [vmem:[#allocation8 + $0xa4] ss:$16 sps:$4 sm:$0xff]  }
 0x122   :  { %v360_v51 = vpop.f32.mrf.mxu0  ;;  %v401_v52 = vpop.f32.mrf.mxu1  ;;  %v2494_v47 = vld [vmem:[#allocation8 + $0x80] ss:$16 sps:$4 sm:$0xff]   ;;  %v2502_v48 = vld [vmem:[#allocation8 + $0x64] ss:$16 sps:$4 sm:$0xff]  }
 0x123   :  { %v408_v53 = vmax.f32 %v400_v50, 0.0  ;;  %v361_v54 = vadd.f32 %v360_v51, %v151_v45  ;;  %v402_v55 = vadd.f32 %v401_v52, %v159_v46  ;;  %v406_v56 = vmax.f32 %v359_v49, 0.0  ;;  %v2488_v45 = vld [vmem:[#allocation8 + $0xa0] ss:$16 sps:$4 sm:$0xff]   ;;  %v2496_v46 = vld [vmem:[#allocation8 + $0x84] ss:$16 sps:$4 sm:$0xff]  }
 0x124   :  { %v362_v57 = vpop.f32.mrf.mxu0  ;;  %v403_v58 = vpop.f32.mrf.mxu1  ;;  %v2500_v49 = vld [vmem:[#allocation8 + $0x60] ss:$16 sps:$4 sm:$0xff]   ;;  %v2508_v50 = vld [vmem:[#allocation8 + $0x44] ss:$16 sps:$4 sm:$0xff]  }
 0x125   :  { %v407_v59 = vmax.f32 %v361_v54, 0.0  ;;  %v409_v60 = vmax.f32 %v402_v55, 0.0  ;;  %v412_v61 = vpack.c.bf16 %v408_v53, %v408_v53  ;;  %v410_v3 = vpack.c.bf16 %v406_v56, %v406_v56  ;;  %v2506_v51 = vld [vmem:[#allocation8 + $0x40] ss:$16 sps:$4 sm:$0xff]   ;;  %v2514_v52 = vld [vmem:[#allocation8 + $0x24] ss:$16 sps:$4 sm:$0xff]  }
 0x126   :  { %v363_v62 = vpop.f32.mrf.mxu0  ;;  %v404_v63 = vpop.f32.mrf.mxu1  ;;  %v2512_v53 = vld [vmem:[#allocation8 + $0x20] ss:$16 sps:$4 sm:$0xff]   ;;  %v2520_v54 = vld [vmem:[#allocation8 + $0x4] ss:$16 sps:$4 sm:$0xff]  }
 0x127   :  { %v411_v0 = vpack.c.bf16 %v407_v59, %v407_v59  ;;  %v413_v1 = vpack.c.bf16 %v409_v60, %v409_v60  ;;  %v2518_v55 = vld [vmem:[#allocation8] ss:$16 sps:$4 sm:$0xff]   ;;  %v2526_v56 = vld [vmem:[#allocation8 + $0x1e4] ss:$16 sps:$4 sm:$0xff]  }
 0x128   :  { %v2524_v57 = vld [vmem:[#allocation8 + $0x1e0] ss:$16 sps:$4 sm:$0xff]   ;;  %v2532_v58 = vld [vmem:[#allocation8 + $0x1c4] ss:$16 sps:$4 sm:$0xff]  }
 0x129   :  { %842 = vmatprep.mubr.bf16.mxu0 %v411_v0  ;;  %883 = vmatprep.mubr.bf16.mxu1 %v413_v1  ;;  %v2530_v59 = vld [vmem:[#allocation8 + $0x1c0] ss:$16 sps:$4 sm:$0xff]   ;;  %v2538_v60 = vld [vmem:[#allocation8 + $0x1a4] ss:$16 sps:$4 sm:$0xff]  }
 0x12a   :  { %843 = vmatmul.mubr.bf16.vlgmr.msra.gmra.mxu0 %v410_v3  ;;  %884 = vmatmul.mubr.bf16.vlgmr.msra.gmra.mxu1 %v412_v61  ;;  %v2536_v61 = vld [vmem:[#allocation8 + $0x1a0] ss:$16 sps:$4 sm:$0xff]   ;;  %v2544_v62 = vld [vmem:[#allocation8 + $0x184] ss:$16 sps:$4 sm:$0xff]  }
 0x12b   :  { %1101 = vmatpush1.bf16.msra.mxu0 %v2428_v2  ;;  %1552 = vmatpush1.bf16.msra.mxu1 %v2476_v34  ;;  %v2542_v63 = vld [vmem:[#allocation8 + $0x180] ss:$16 sps:$4 sm:$0xff]   ;;  %v2550_v0 = vld [vmem:[#allocation8 + $0x164] ss:$16 sps:$4 sm:$0xff]   ;;  %v2517_v34 = vld [vmem:[#allocation8 + $0x2c] ss:$16 sps:$4 sm:$0xff]  }
 0x12c   :  { %1102 = vmatprep.subr.bf16.mxu0 %v2433_v4  ;;  %1553 = vmatprep.subr.bf16.mxu1 %v2484_v40  ;;  %v2548_v1 = vld [vmem:[#allocation8 + $0x160] ss:$16 sps:$4 sm:$0xff]   ;;  %v2556_v2 = vld [vmem:[#allocation8 + $0x144] ss:$16 sps:$4 sm:$0xff]   ;;  %v2521_v40 = vld [vmem:[#allocation8 + $0x8] ss:$16 sps:$4 sm:$0xff]  }
 0x12d   :  { %v2554_v3 = vld [vmem:[#allocation8 + $0x140] ss:$16 sps:$4 sm:$0xff]  }
 0x12e   :  { %v478_v4 = vld [vmem:[%s2877_s4] sm:$0x3] }
 0x12f   :  { %1103 = vmatpush1.bf16.msra.mxu0 %v2431_v5  ;;  %1554 = vmatpush1.bf16.msra.mxu1 %v2482_v43  ;;  %v483_v5 = vrot.slane %v478_v4, %v2832_v38  ;;  %v2529_v43 = vld [vmem:[#allocation8 + $0x1ec] ss:$16 sps:$4 sm:$0xff]  }
 0x130   :  { %1104 = vmatprep.subr.bf16.mxu0 %v2436_v6  ;;  %1555 = vmatprep.subr.bf16.mxu1 %v2490_v44  ;;  %v487_v6 = vrot.slane %v478_v4, %v2839_v41  ;;  %v2527_v44 = vld [vmem:[#allocation8 + $0x1e8] ss:$16 sps:$4 sm:$0xff]  }
 0x133   :  { %1105 = vmatpush1.bf16.msra.mxu0 %v2434_v7  ;;  %1556 = vmatpush1.bf16.msra.mxu1 %v2488_v45  ;;  %v2535_v45 = vld [vmem:[#allocation8 + $0x1cc] ss:$16 sps:$4 sm:$0xff]  }
 0x134   :  { %1106 = vmatprep.subr.bf16.mxu0 %v2439_v8  ;;  %1557 = vmatprep.subr.bf16.mxu1 %v2496_v46  ;;  %v2533_v46 = vld [vmem:[#allocation8 + $0x1c8] ss:$16 sps:$4 sm:$0xff]  }
 0x137   :  { %1107 = vmatpush1.bf16.msra.mxu0 %v2437_v9  ;;  %1558 = vmatpush1.bf16.msra.mxu1 %v2494_v47  ;;  %v2541_v47 = vld [vmem:[#allocation8 + $0x1ac] ss:$16 sps:$4 sm:$0xff]  }
 0x138   :  { %1108 = vmatprep.subr.bf16.mxu0 %v2442_v10  ;;  %1559 = vmatprep.subr.bf16.mxu1 %v2502_v48  ;;  %v2539_v48 = vld [vmem:[#allocation8 + $0x1a8] ss:$16 sps:$4 sm:$0xff]  }
 0x13b   :  { %1109 = vmatpush1.bf16.msra.mxu0 %v2440_v11  ;;  %1560 = vmatpush1.bf16.msra.mxu1 %v2500_v49  ;;  %v2547_v49 = vld [vmem:[#allocation8 + $0x18c] ss:$16 sps:$4 sm:$0xff]  }
 0x13c   :  { %1110 = vmatprep.subr.bf16.mxu0 %v2445_v12  ;;  %1561 = vmatprep.subr.bf16.mxu1 %v2508_v50  ;;  %v2545_v50 = vld [vmem:[#allocation8 + $0x188] ss:$16 sps:$4 sm:$0xff]  }
 0x13f   :  { %1111 = vmatpush1.bf16.msra.mxu0 %v2443_v13  ;;  %1562 = vmatpush1.bf16.msra.mxu1 %v2506_v51  ;;  %v2553_v51 = vld [vmem:[#allocation8 + $0x16c] ss:$16 sps:$4 sm:$0xff]  }
 0x140   :  { %1112 = vmatprep.subr.bf16.mxu0 %v2448_v14  ;;  %1563 = vmatprep.subr.bf16.mxu1 %v2514_v52  ;;  %v2551_v52 = vld [vmem:[#allocation8 + $0x168] ss:$16 sps:$4 sm:$0xff]  }
 0x143   :  { %1113 = vmatpush1.bf16.msra.mxu0 %v2446_v15  ;;  %1564 = vmatpush1.bf16.msra.mxu1 %v2512_v53  ;;  %v2559_v53 = vld [vmem:[#allocation8 + $0x14c] ss:$16 sps:$4 sm:$0xff]  }
 0x144   :  { %1114 = vmatprep.subr.bf16.mxu0 %v2451_v16  ;;  %1565 = vmatprep.subr.bf16.mxu1 %v2520_v54  ;;  %v2557_v54 = vld [vmem:[#allocation8 + $0x148] ss:$16 sps:$4 sm:$0xff]  }
 0x147   :  { %1115 = vmatpush1.bf16.msra.mxu0 %v2449_v17  ;;  %1566 = vmatpush1.bf16.msra.mxu1 %v2518_v55  ;;  %v2562_v55 = vld [vmem:[#allocation8 + $0x124] ss:$16 sps:$4 sm:$0xff]  }
 0x148   :  { %1116 = vmatprep.subr.bf16.mxu0 %v2454_v18  ;;  %1567 = vmatprep.subr.bf16.mxu1 %v2526_v56  ;;  %v2565_v56 = vld [vmem:[#allocation8 + $0x12c] ss:$16 sps:$4 sm:$0xff]  }
 0x14b   :  { %1117 = vmatpush2.bf16.msra.mxu0 %v2452_v19  ;;  %1568 = vmatpush2.bf16.msra.mxu1 %v2524_v57  ;;  %v2560_v57 = vld [vmem:[#allocation8 + $0x120] ss:$16 sps:$4 sm:$0xff]  }
 0x14c   :  { %1118 = vmatprep.subr.bf16.mxu0 %v2457_v20  ;;  %1569 = vmatprep.subr.bf16.mxu1 %v2532_v58  ;;  %v2563_v58 = vld [vmem:[#allocation8 + $0x128] ss:$16 sps:$4 sm:$0xff]  }
 0x14f   :  { %1119 = vmatpush2.bf16.msra.mxu0 %v2455_v21  ;;  %1570 = vmatpush2.bf16.msra.mxu1 %v2530_v59  ;;  %v2568_v59 = vld [vmem:[#allocation8 + $0x104] ss:$16 sps:$4 sm:$0xff]  }
 0x150   :  { %1120 = vmatprep.subr.bf16.mxu0 %v2460_v22  ;;  %1571 = vmatprep.subr.bf16.mxu1 %v2538_v60  ;;  %v2479_v22 = vld [vmem:[#allocation8 + $0xe8] ss:$16 sps:$4 sm:$0xff]   ;;  %v2571_v60 = vld [vmem:[#allocation8 + $0x10c] ss:$16 sps:$4 sm:$0xff]  }
 0x153   :  { %1121 = vmatpush2.bf16.msra.mxu0 %v2458_v23  ;;  %1572 = vmatpush2.bf16.msra.mxu1 %v2536_v61  ;;  %v2566_v61 = vld [vmem:[#allocation8 + $0x100] ss:$16 sps:$4 sm:$0xff]  }
 0x154   :  { %1122 = vmatprep.subr.bf16.mxu0 %v2463_v24  ;;  %1573 = vmatprep.subr.bf16.mxu1 %v2544_v62  ;;  %v2487_v24 = vld [vmem:[#allocation8 + $0xcc] ss:$16 sps:$4 sm:$0xff]   ;;  %v2569_v62 = vld [vmem:[#allocation8 + $0x108] ss:$16 sps:$4 sm:$0xff]  }
 0x157   :  { %1123 = vmatpush2.bf16.msra.mxu0 %v2461_v25  ;;  %1574 = vmatpush2.bf16.msra.mxu1 %v2542_v63  ;;  %v2485_v25 = vld [vmem:[#allocation8 + $0xc8] ss:$16 sps:$4 sm:$0xff]  }
 0x158   :  { %1124 = vmatprep.subr.bf16.mxu0 %v2466_v26  ;;  %1575 = vmatprep.subr.bf16.mxu1 %v2550_v0  ;;  %v2493_v26 = vld [vmem:[#allocation8 + $0xac] ss:$16 sps:$4 sm:$0xff]   ;;  %v928_v0 = vld [vmem:[%s2879_s6] sm:$0x3] }
 0x159   :  { %v2572_v63 = vld [vmem:[#allocation10 + $0x78] sm:$0xff]  }
 0x15b   :  { %1125 = vmatpush2.bf16.msra.mxu0 %v2464_v27  ;;  %1576 = vmatpush2.bf16.msra.mxu1 %v2548_v1  ;;  %v2491_v27 = vld [vmem:[#allocation8 + $0xa8] ss:$16 sps:$4 sm:$0xff]   ;;  %v933_v1 = vrot.slane %v928_v0, %v2832_v38 }
 0x15c   :  { %1126 = vmatprep.subr.bf16.mxu0 %v2469_v28  ;;  %1577 = vmatprep.subr.bf16.mxu1 %v2556_v2  ;;  %v2499_v28 = vld [vmem:[#allocation8 + $0x8c] ss:$16 sps:$4 sm:$0xff]   ;;  %v937_v2 = vrot.slane %v928_v0, %v2839_v41 }
 0x15d   :  { %v2600_v0 = vld [vmem:[#allocation10 + $0xc8] sm:$0xff]  }
 0x15f   :  { %1127 = vmatpush2.bf16.msra.mxu0 %v2467_v29  ;;  %1578 = vmatpush2.bf16.msra.mxu1 %v2554_v3  ;;  %v2497_v29 = vld [vmem:[#allocation8 + $0x88] ss:$16 sps:$4 sm:$0xff]  }
 0x160   :  { %1128 = vmatprep.subr.bf16.mxu0 %v2472_v30  ;;  %v2505_v30 = vld [vmem:[#allocation8 + $0x6c] ss:$16 sps:$4 sm:$0xff]   ;;  %1579 = vmatprep.subr.bf16.mxu1 %v2562_v55 }
 0x161   :  { %v2592_v55 = vld [vmem:[#allocation10 + $0xe8] sm:$0xff]  }
 0x163   :  { %1129 = vmatpush2.bf16.msra.mxu0 %v2470_v31  ;;  %v2503_v31 = vld [vmem:[#allocation8 + $0x68] ss:$16 sps:$4 sm:$0xff]   ;;  %1580 = vmatpush2.bf16.msra.mxu1 %v2560_v57  ;;  %v2594_v57 = vld [vmem:[#allocation10 + $0xe0] sm:$0xff]  }
 0x164   :  { %1130 = vmatprep.subr.bf16.mxu0 %v2475_v32  ;;  %v2511_v32 = vld [vmem:[#allocation8 + $0x4c] ss:$16 sps:$4 sm:$0xff]   ;;  %1581 = vmatprep.subr.bf16.mxu1 %v2568_v59 }
 0x165   :  { %v2596_v59 = vld [vmem:[#allocation10 + $0xd8] sm:$0xff]  }
 0x167   :  { %1131 = vmatpush2.bf16.msra.mxu0 %v2473_v33  ;;  %v2509_v33 = vld [vmem:[#allocation8 + $0x48] ss:$16 sps:$4 sm:$0xff]   ;;  %1582 = vmatpush2.bf16.msra.mxu1 %v2566_v61  ;;  %v2598_v61 = vld [vmem:[#allocation10 + $0xd0] sm:$0xff]  }
 0x168   :  { %1592 = vmatprep.subr.bf16.mxu0 %v2481_v36  ;;  %v2523_v36 = vld [vmem:[#allocation8 + $0xc] ss:$16 sps:$4 sm:$0xff]   ;;  %2227 = vmatprep.subr.bf16.mxu1 %v2572_v63 }
 0x1ea   :  { %v844_v7 = vpop.f32.mrf.mxu0  ;;  %v885_v8 = vpop.f32.mrf.mxu1 }
 0x1eb   :  { %v845_v9 = vadd.f32 %v844_v7, %v483_v5 }
 0x1ec   :  { %v846_v10 = vpop.f32.mrf.mxu0  ;;  %v887_v11 = vpop.f32.mrf.mxu1 }
 0x1ed   :  { %v886_v12 = vadd.f32 %v885_v8, %v845_v9  ;;  %v847_v13 = vadd.f32 %v846_v10, %v487_v6 }
 0x1ee   :  { %v848_v14 = vpop.f32.mrf.mxu0  ;;  %v889_v15 = vpop.f32.mrf.mxu1 }
 0x1ef   :  { %v888_v16 = vadd.f32 %v887_v11, %v847_v13  ;;  %v892_v17 = vmax.f32 %v886_v12, 0.0  ;;  %v2573_v12 = vld [vmem:[#allocation10 + $0x38] sm:$0xff]   ;;  %v2574_v14 = vld [vmem:[#allocation10 + $0x70] sm:$0xff]  }
 0x1f0   :  { %v849_v18 = vpop.f32.mrf.mxu0  ;;  %v890_v19 = vpop.f32.mrf.mxu1  ;;  %v2575_v15 = vld [vmem:[#allocation10 + $0x30] sm:$0xff]  }
 0x1f1   :  { %v893_v20 = vmax.f32 %v888_v16, 0.0  ;;  %v894_v23 = vpack.c.bf16 %v892_v17, %v892_v17  ;;  %v2576_v16 = vld [vmem:[#allocation10 + $0x68] sm:$0xff]   ;;  %v2578_v18 = vld [vmem:[#allocation10 + $0x60] sm:$0xff]  }
 0x1f2   :  { %v2577_v17 = vld [vmem:[#allocation10 + $0x28] sm:$0xff]   ;;  %v2579_v19 = vld [vmem:[#allocation10 + $0x20] sm:$0xff]  }
 0x1f3   :  { %v895_v21 = vpack.c.bf16 %v893_v20, %v893_v20  ;;  %v2580_v20 = vld [vmem:[#allocation10 + $0x58] sm:$0xff]  }
 0x1f5   :  { %1132 = vmatprep.mubr.bf16.mxu0 %v895_v21  ;;  %v2581_v21 = vld [vmem:[#allocation10 + $0x18] sm:$0xff]  }
 0x1f6   :  { %1133 = vmatmul.mubr.bf16.vlgmr.msra.gmra.mxu0 %v894_v23  ;;  %v2583_v23 = vld [vmem:[#allocation10 + $0x10] sm:$0xff]  }
 0x1f7   :  { %1593 = vmatpush1.bf16.msra.mxu0 %v2479_v22  ;;  %v2582_v22 = vld [vmem:[#allocation10 + $0x50] sm:$0xff]  }
 0x1f8   :  { %1594 = vmatprep.subr.bf16.mxu0 %v2487_v24  ;;  %v2584_v24 = vld [vmem:[#allocation10 + $0x48] sm:$0xff]  }
 0x1fb   :  { %1595 = vmatpush1.bf16.msra.mxu0 %v2485_v25  ;;  %v2585_v25 = vld [vmem:[#allocation10 + $0x8] sm:$0xff]  }
 0x1fc   :  { %1596 = vmatprep.subr.bf16.mxu0 %v2493_v26  ;;  %v2586_v26 = vld [vmem:[#allocation10 + $0x40] sm:$0xff]  }
 0x1ff   :  { %1597 = vmatpush1.bf16.msra.mxu0 %v2491_v27  ;;  %v2587_v27 = vld [vmem:[#allocation10] sm:$0xff]  }
 0x200   :  { %1598 = vmatprep.subr.bf16.mxu0 %v2499_v28  ;;  %v2588_v28 = vld [vmem:[#allocation10 + $0xf8] sm:$0xff]  }
 0x203   :  { %1599 = vmatpush1.bf16.msra.mxu0 %v2497_v29  ;;  %v1209_v29 = vld [vmem:[%s2881_s8] sm:$0xf] }
 0x204   :  { %1600 = vmatprep.subr.bf16.mxu0 %v2505_v30  ;;  %v1214_v30 = vrot.slane %v1209_v29, %v2832_v38  ;;  %v1222_v63 = vrot.slane %v1209_v29, %v154_v39  ;;  %v2194_v39 = vld [vmem:[%s2883_s10] ss:$0 sm:$0xff] }
 0x207   :  { %1601 = vmatpush1.bf16.msra.mxu0 %v2503_v31  ;;  %v1218_v31 = vrot.slane %v1209_v29, %v2839_v41 }
 0x208   :  { %1602 = vmatprep.subr.bf16.mxu0 %v2511_v32  ;;  %v1226_v32 = vrot.slane %v1209_v29, %v158_v42  ;;  %v2591_v42 = vld [vmem:[#allocation10 + $0xb0] sm:$0xff]  }
 0x20b   :  { %1603 = vmatpush1.bf16.msra.mxu0 %v2509_v33 }
 0x20c   :  { %1604 = vmatprep.subr.bf16.mxu0 %v2517_v34 }
 0x20f   :  { %1605 = vmatpush1.bf16.msra.mxu0 %v2515_v35 }
 0x210   :  { %1606 = vmatprep.subr.bf16.mxu0 %v2523_v36 }
 0x213   :  { %1607 = vmatpush1.bf16.msra.mxu0 %v2521_v40 }
 0x214   :  { %1608 = vmatprep.subr.bf16.mxu0 %v2529_v43 }
 0x217   :  { %1609 = vmatpush2.bf16.msra.mxu0 %v2527_v44 }
 0x218   :  { %1610 = vmatprep.subr.bf16.mxu0 %v2535_v45 }
 0x21b   :  { %1611 = vmatpush2.bf16.msra.mxu0 %v2533_v46 }
 0x21c   :  { %1612 = vmatprep.subr.bf16.mxu0 %v2541_v47 }
 0x21f   :  { %1613 = vmatpush2.bf16.msra.mxu0 %v2539_v48 }
 0x220   :  { %1614 = vmatprep.subr.bf16.mxu0 %v2547_v49 }
 0x223   :  { %1615 = vmatpush2.bf16.msra.mxu0 %v2545_v50 }
 0x224   :  { %1616 = vmatprep.subr.bf16.mxu0 %v2553_v51 }
 0x227   :  { %1617 = vmatpush2.bf16.msra.mxu0 %v2551_v52  ;;  %v2589_v52 = vld [vmem:[#allocation10 + $0xb8] sm:$0xff]  }
 0x228   :  { %1618 = vmatprep.subr.bf16.mxu0 %v2559_v53  ;;  %v2590_v53 = vld [vmem:[#allocation10 + $0xf0] sm:$0xff]  }
 0x22b   :  { %1619 = vmatpush2.bf16.msra.mxu0 %v2557_v54 }
 0x22c   :  { %1620 = vmatprep.subr.bf16.mxu0 %v2565_v56  ;;  %v2593_v56 = vld [vmem:[#allocation10 + $0xa8] sm:$0xff]  }
 0x22f   :  { %1621 = vmatpush2.bf16.msra.mxu0 %v2563_v58  ;;  %v2595_v58 = vld [vmem:[#allocation10 + $0xa0] sm:$0xff]  }
 0x230   :  { %1622 = vmatprep.subr.bf16.mxu0 %v2571_v60  ;;  %v2597_v60 = vld [vmem:[#allocation10 + $0x98] sm:$0xff]  }
 0x233   :  { %1623 = vmatpush2.bf16.msra.mxu0 %v2569_v62  ;;  %v2599_v62 = vld [vmem:[#allocation10 + $0x90] sm:$0xff]  }
 0x2b6   :  { %v1134_v3 = vpop.f32.mrf.mxu0 }
 0x2b7   :  { %v1135_v4 = vadd.f32 %v1134_v3, %v933_v1  ;;  %v2601_v1 = vld [vmem:[#allocation10 + $0x88] sm:$0xff]   ;;  %v2602_v3 = vld [vmem:[#allocation10 + $0xc0] sm:$0xff]  }
 0x2b8   :  { %v1136_v5 = vpop.f32.mrf.mxu0 }
 0x2b9   :  { %v1137_v6 = vadd.f32 %v1136_v5, %v937_v2  ;;  %v1141_v7 = vmax.f32 %v1135_v4, 0.0  ;;  %v2603_v4 = vld [vmem:[#allocation10 + $0x80] sm:$0xff]  }
 0x2ba   :  { %v1138_v8 = vpop.f32.mrf.mxu0 }
 0x2bb   :  { %v1142_v9 = vmax.f32 %v1137_v6, 0.0  ;;  %v1143_v13 = vpack.c.bf16 %v1141_v7, %v1141_v7 }
 0x2bc   :  { %v1139_v10 = vpop.f32.mrf.mxu0 }
 0x2bd   :  { %v1144_v11 = vpack.c.bf16 %v1142_v9, %v1142_v9 }
 0x2bf   :  { %1583 = vmatprep.mubr.bf16.mxu1 %v1144_v11  ;;  %1624 = vmatprep.mubr.bf16.mxu0 %v1144_v11 }
 0x2c0   :  { %1584 = vmatmul.mubr.bf16.vlgmr.msra.gmra.mxu1 %v1143_v13  ;;  %1625 = vmatmul.mubr.bf16.vlgmr.msra.gmra.mxu0 %v1143_v13 }
 0x2c1   :  { %2228 = vmatpush3.bf16.msra.mxu1 %v2573_v12 }
 0x2c2   :  { %2229 = vmatprep.subr.bf16.mxu1 %v2574_v14 }
 0x2c5   :  { %2230 = vmatpush3.bf16.msra.mxu1 %v2575_v15 }
 0x2c6   :  { %2231 = vmatprep.subr.bf16.mxu1 %v2576_v16 }
 0x2c9   :  { %2232 = vmatpush3.bf16.msra.mxu1 %v2577_v17 }
 0x2ca   :  { %2233 = vmatprep.subr.bf16.mxu1 %v2578_v18 }
 0x2cd   :  { %2234 = vmatpush3.bf16.msra.mxu1 %v2579_v19 }
 0x2ce   :  { %2235 = vmatprep.subr.bf16.mxu1 %v2580_v20 }
 0x2d1   :  { %2236 = vmatpush3.bf16.msra.mxu1 %v2581_v21 }
 0x2d2   :  { %2237 = vmatprep.subr.bf16.mxu1 %v2582_v22 }
 0x2d5   :  { %2238 = vmatpush3.bf16.msra.mxu1 %v2583_v23 }
 0x2d6   :  { %2239 = vmatprep.subr.bf16.mxu1 %v2584_v24 }
 0x2d9   :  { %2240 = vmatpush3.bf16.msra.mxu1 %v2585_v25 }
 0x2da   :  { %2241 = vmatprep.subr.bf16.mxu1 %v2586_v26 }
 0x2dd   :  { %2242 = vmatpush3.bf16.msra.mxu1 %v2587_v27 }
 0x2de   :  { %2249 = vmatprep.subr.bf16.mxu1 %v2588_v28 }
 0x380   :  { %v1585_v33 = vpop.f32.mrf.mxu1  ;;  %v1626_v34 = vpop.f32.mrf.mxu0 }
 0x381   :  { %v1586_v35 = vadd.f32 %v1585_v33, %v1214_v30  ;;  %v1627_v2 = vadd.f32 %v1626_v34, %v1222_v63 }
 0x382   :  { %v1587_v36 = vpop.f32.mrf.mxu1  ;;  %v1628_v40 = vpop.f32.mrf.mxu0 }
 0x383   :  { %v1588_v43 = vadd.f32 %v1587_v36, %v1218_v31  ;;  %v1629_v44 = vadd.f32 %v1628_v40, %v1226_v32  ;;  %v1633_v45 = vmax.f32 %v1586_v35, 0.0  ;;  %v1635_v5 = vmax.f32 %v1627_v2, 0.0 }
 0x384   :  { %v1589_v46 = vpop.f32.mrf.mxu1  ;;  %v1630_v47 = vpop.f32.mrf.mxu0 }
 0x385   :  { %v1634_v48 = vmax.f32 %v1588_v43, 0.0  ;;  %v1636_v49 = vmax.f32 %v1629_v44, 0.0  ;;  %v1637_v41 = vpack.c.bf16 %v1633_v45, %v1633_v45  ;;  %v1639_v6 = vpack.c.bf16 %v1635_v5, %v1635_v5 }
 0x386   :  { %v1590_v50 = vpop.f32.mrf.mxu1  ;;  %v1631_v51 = vpop.f32.mrf.mxu0 }
 0x387   :  { %v1638_v38 = vpack.c.bf16 %v1634_v48, %v1634_v48  ;;  %v1640_v54 = vpack.c.bf16 %v1636_v49, %v1636_v49 }
 0x389   :  { %1936 = vmatprep.mubr.bf16.mxu1 %v1638_v38 }
 0x38a   :  { %1937 = vmatmul.mubr.bf16.vlgmr.msra.gmra.mxu1 %v1637_v41 }
 0x38b   :  { %2250 = vmatpush3.bf16.msra.mxu1 %v2589_v52  ;;  %1976 = vmatprep.mubr.bf16.mxu1 %v1640_v54 }
 0x38c   :  { %2251 = vmatprep.subr.bf16.mxu1 %v2590_v53 }
 0x38f   :  { %2252 = vmatpush3.bf16.msra.mxu1 %v2591_v42 }
 0x390   :  { %2253 = vmatprep.subr.bf16.mxu1 %v2592_v55 }
 0x393   :  { %2254 = vmatpush3.bf16.msra.mxu1 %v2593_v56 }
 0x394   :  { %2255 = vmatprep.subr.bf16.mxu1 %v2594_v57 }
 0x397   :  { %2256 = vmatpush3.bf16.msra.mxu1 %v2595_v58 }
 0x398   :  { %2257 = vmatprep.subr.bf16.mxu1 %v2596_v59 }
 0x39b   :  { %2258 = vmatpush3.bf16.msra.mxu1 %v2597_v60 }
 0x39c   :  { %2259 = vmatprep.subr.bf16.mxu1 %v2598_v61 }
 0x39f   :  { %2260 = vmatpush3.bf16.msra.mxu1 %v2599_v62 }
 0x3a0   :  { %2261 = vmatprep.subr.bf16.mxu1 %v2600_v0 }
 0x3a3   :  { %2262 = vmatpush3.bf16.msra.mxu1 %v2601_v1 }
 0x3a4   :  { %2263 = vmatprep.subr.bf16.mxu1 %v2602_v3 }
 0x3a7   :  { %2264 = vmatpush3.bf16.msra.mxu1 %v2603_v4 }
 0x3aa   :  { %1977 = vmatmul.mubr.bf16.vlgmr.msra.gmra.mxu1 %v1639_v6 }
 0x44a   :  { %v2243_v7 = vpop.f32.mrf.mxu1 }
 0x44c   :  { %v2244_v8 = vpop.f32.mrf.mxu1 }
 0x44d   :  { %v2245_v37 = vadd.f32 %v2244_v8, %v2243_v7 }
 0x44e   :  { %v2246_v9 = vpop.f32.mrf.mxu1 }
 0x44f   :  { %v1939_v13 = vadd.f32 %v2245_v37, %v2194_v39 }
 0x450   :  { %v2247_v10 = vpop.f32.mrf.mxu1 }
 0x46a   :  { %v2265_v11 = vpop.f32.mrf.mxu1 }
 0x46c   :  { %v2266_v12 = vpop.f32.mrf.mxu1 }
 0x46d   :  { %v2267_v14 = vadd.f32 %v2266_v12, %v2265_v11 }
 0x46e   :  { %v2268_v15 = vpop.f32.mrf.mxu1 }
 0x46f   :  { %v1979_v16 = vadd.f32 %v2267_v14, %v1939_v13 }
 0x470   :  { %v2269_v17 = vpop.f32.mrf.mxu1 }
 0x471   :  { %1984 = vst [vmem:[#allocation11] sm:$0xff] %v1979_v16 }
 0x472   :  { %2715 = shalt.err (!%p2712_p1)
}
 0x473   :  { %1994 = dma.vmem_to_hbm [thread:$0]  %s1992_s13, 128, %s2884_s11, [#allocation4]  }
 0x474   :  { %2730 = dma.done.wait [#allocation4], 128  }
 0x475   :  { %2731 = vsyncadd [#allocation4], 4294967168 }
 0x476   :  { %1998 = vsyncpa [#allocation3], 1 }
 0x477   :  { %1999 = vsyncpa [#allocation6], 1 }
 0x478   :  { %2000 = vsyncpa [#allocation9], 1 }
 0x479   :  { %2001 = vsyncpa [#allocation4], 1 }

// kernel: _forward.1
= control target key start
LH: loop header
LB: loop body
LE: loop exit
PB: predicated region body
PF: predicated region fallthrough
CT: control target
= control target key end

     0   :  { %16 = vsyncpa [#allocation3], 0  ;;  %s2873_s0 = inlined_call_operand.vmem [shape: f32[8,128], index: 0, kind: input, shape index: {}]   ;;  %s2874_s1 = inlined_call_operand.hbm [shape: bf16[128,512], index: 1, kind: input, shape index: {}]   ;;  %s2875_s2 = inlined_call_operand.vmem [shape: f32[1,512], index: 2, kind: input, shape index: {}]   ;;  %s2876_s3 = inlined_call_operand.hbm [shape: bf16[512,256], index: 3, kind: input, shape index: {}]   ;;  %s2877_s4 = inlined_call_operand.vmem [shape: f32[1,256], index: 4, kind: input, shape index: {}]   ;;  %s2878_s5 = inlined_call_operand.hbm [shape: bf16[256,256], index: 5, kind: input, shape index: {}]   ;;  %s2879_s6 = inlined_call_operand.vmem [shape: f32[1,256], index: 6, kind: input, shape index: {}]   ;;  %s2880_s7 = inlined_call_operand.hbm [shape: bf16[256,512], index: 7, kind: input, shape index: {}]   ;;  %s2881_s8 = inlined_call_operand.vmem [shape: f32[1,512], index: 8, kind: input, shape index: {}]   ;;  %s2882_s9 = inlined_call_operand.hbm [shape: bf16[512,128], index: 9, kind: input, shape index: {}]   ;;  %s2883_s10 = inlined_call_operand.vmem [shape: f32[1,128], index: 10, kind: input, shape index: {}]   ;;  %s2884_s11 = inlined_call_operand.hbm [shape: f32[8,128], index: 11, kind: output, shape index: {}]  }
   0x1   :  { %17 = vsyncpa [#allocation6], 0 }
   0x2   :  { %18 = vsyncpa [#allocation9], 0 }
   0x3   :  { %19 = vsyncpa [#allocation4], 0  ;;  %s2732_s17 = smov [#allocation5]  }
   0x4   :  { %s41_s18 = sshll.u32 %s2732_s17, 4  ;;  %s42_s18 = int_to_ptr.vmem [resolvable:$true] %s41_s18 }
   0x5   :  { %s2612_s19 = scalar_lea.vmem %s42_s18, 8192  ;;  %p2617_p1 = scmp.lt.s32.totalorder %s42_s18, %s42_s18 }
   0x6   :  { %p2613_p0 = scmp.ne.s32.totalorder %s42_s18, %s2612_s19  ;;  %p2618_p2 = scmp.lt.s32.totalorder %s2612_s19, %s2612_s19 }
   0x8   :  { %p2619_p3 = por %p2618_p2, %p2617_p1 }
   0xa   :  { %p2620_p4 = pnand %p2619_p3, %p2613_p0 }
   0xc   :  { %2623 = shalt.err (!%p2620_p4)
}
   0xd   :  { %s2733_s20 = smov 128   ;;  %s2734_s21 = smov 8  }
   0xe   :  { %47 = dma.hbm_to_vmem [thread:$0]  %s2876_s3, 8192, %s42_s18, [#allocation6], %s2733_s20, %s2733_s20, %s2734_s21  }
   0xf   :  { %s2735_s24 = smov [#allocation8]   ;;  %s2736_s26 = smov [#allocation2]  }
  0x10   :  { %s69_s25 = sshll.u32 %s2735_s24, 4  ;;  %s27_s27 = sshll.u32 %s2736_s26, 4  ;;  %s70_s25 = int_to_ptr.vmem [resolvable:$true] %s69_s25  ;;  %s28_s27 = int_to_ptr.vmem [resolvable:$true] %s27_s27 }
  0x11   :  { %s2632_s28 = scalar_lea.vmem %s70_s25, 8192  ;;  %p2637_p6 = scmp.lt.s32.totalorder %s70_s25, %s70_s25 }
  0x12   :  { %p2633_p5 = scmp.ne.s32.totalorder %s70_s25, %s2632_s28  ;;  %p2638_p7 = scmp.lt.s32.totalorder %s2632_s28, %s2632_s28 }
  0x14   :  { %p2639_p8 = por %p2638_p7, %p2637_p6 }
  0x16   :  { %p2640_p9 = pnand %p2639_p8, %p2633_p5 }
  0x18   :  { %2643 = shalt.err (!%p2640_p9)
}
  0x19   :  { %s2737_s29 = smov 256   ;;  %s2738_s30 = smov 16  }
  0x1a   :  { %75 = dma.hbm_to_vmem [thread:$0]  %s2880_s7, 8192, %s70_s25, [#allocation9], %s2737_s29, %s2737_s29, %s2738_s30  }
  0x1b   :  { %s2652_s3 = scalar_lea.vmem %s28_s27, 4096  ;;  %p2657_p11 = scmp.lt.s32.totalorder %s28_s27, %s28_s27 }
  0x1c   :  { %p2653_p10 = scmp.ne.s32.totalorder %s28_s27, %s2652_s3  ;;  %p2658_p12 = scmp.lt.s32.totalorder %s2652_s3, %s2652_s3 }
  0x1e   :  { %p2659_p13 = por %p2658_p12, %p2657_p11 }
  0x20   :  { %p2660_p0 = pnand %p2659_p13, %p2653_p10 }
  0x22   :  { %2663 = shalt.err (!%p2660_p0)
}
  0x23   :  { %33 = dma.hbm_to_vmem [thread:$0]  %s2874_s1, 4096, %s28_s27, [#allocation3], %s2737_s29, %s2737_s29, %s2738_s30  }
  0x24   :  { %s2739_s16 = smov [#allocation7]   ;;  %s2740_s18 = smov [#allocation10]  }
  0x25   :  { %s55_s17 = sshll.u32 %s2739_s16, 4  ;;  %s83_s19 = sshll.u32 %s2740_s18, 4  ;;  %s56_s17 = int_to_ptr.vmem [resolvable:$true] %s55_s17  ;;  %s84_s19 = int_to_ptr.vmem [resolvable:$true] %s83_s19 }
  0x26   :  { %s2672_s22 = scalar_lea.vmem %s56_s17, 4096  ;;  %p2677_p2 = scmp.lt.s32.totalorder %s56_s17, %s56_s17 }
  0x27   :  { %p2673_p1 = scmp.ne.s32.totalorder %s56_s17, %s2672_s22  ;;  %p2678_p3 = scmp.lt.s32.totalorder %s2672_s22, %s2672_s22 }
  0x29   :  { %p2679_p4 = por %p2678_p3, %p2677_p2 }
  0x2b   :  { %p2680_p5 = pnand %p2679_p4, %p2673_p1 }
  0x2d   :  { %2683 = shalt.err (!%p2680_p5)
}
  0x2e   :  { %61 = dma.hbm_to_vmem [thread:$0]  %s2878_s5, 4096, %s56_s17, [#allocation6], %s2733_s20, %s2733_s20, %s2734_s21  }
  0x2f   :  { %s2692_s1 = scalar_lea.vmem %s84_s19, 4096  ;;  %p2697_p7 = scmp.lt.s32.totalorder %s84_s19, %s84_s19 }
  0x30   :  { %p2693_p6 = scmp.ne.s32.totalorder %s84_s19, %s2692_s1  ;;  %p2698_p8 = scmp.lt.s32.totalorder %s2692_s1, %s2692_s1 }
  0x32   :  { %p2699_p9 = por %p2698_p8, %p2697_p7 }
  0x34   :  { %p2700_p10 = pnand %p2699_p9, %p2693_p6 }
  0x36   :  { %2703 = shalt.err (!%p2700_p10)
}
  0x37   :  { %s2741_s24 = smov 64   ;;  %s2742_s25 = smov 4  }
  0x38   :  { %89 = dma.hbm_to_vmem [thread:$0]  %s2882_s9, 4096, %s84_s19, [#allocation9], %s2741_s24, %s2741_s24, %s2742_s25  }
  0x39   :  { %2724 = dma.done.wait [#allocation3], 4096  }
  0x3a   :  { %2725 = vsyncadd [#allocation3], 4294963200 }
  0x3b   :  { %2726 = dma.done.wait [#allocation6], 12288  }
  0x3c   :  { %2727 = vsyncadd [#allocation6], 4294955008 }
  0x3d   :  { %2728 = dma.done.wait [#allocation9], 12288  }
  0x3e   :  { %2729 = vsyncadd [#allocation9], 4294955008  ;;  %v2743_v0 = vmov 0   ;;  %v2284_v1 = vld [vmem:[#allocation2 + $0xe4] ss:$16 sps:$4 sm:$0xff]   ;;  %s2744_s12 = smov [#allocation11]  }
  0x3f   :  { %356 = vmatprep.mubr.bf16.mxu0 %v2743_v0  ;;  %397 = vmatprep.mubr.bf16.mxu1 %v2743_v0  ;;  %v2286_v2 = vld [vmem:[#allocation2 + $0xec] ss:$16 sps:$4 sm:$0xff]   ;;  %v2288_v3 = vld [vmem:[#allocation2 + $0xe0] ss:$16 sps:$4 sm:$0xff]   ;;  %v2289_v4 = vld [vmem:[#allocation2 + $0xe8] ss:$16 sps:$4 sm:$0xff]  }
  0x40   :  { %324 = vmatprep.subr.bf16.mxu0 %v2284_v1  ;;  %365 = vmatprep.subr.bf16.mxu1 %v2286_v2  ;;  %v2290_v5 = vld [vmem:[#allocation2 + $0xc4] ss:$16 sps:$4 sm:$0xff]   ;;  %v2292_v6 = vld [vmem:[#allocation2 + $0xcc] ss:$16 sps:$4 sm:$0xff]   ;;  %v2294_v7 = vld [vmem:[#allocation2 + $0xc0] ss:$16 sps:$4 sm:$0xff]  }
  0x41   :  { %325 = vmatpush1.bf16.msra.mxu0 %v2288_v3  ;;  %366 = vmatpush1.bf16.msra.mxu1 %v2289_v4  ;;  %v2295_v8 = vld [vmem:[#allocation2 + $0xc8] ss:$16 sps:$4 sm:$0xff]   ;;  %v2296_v9 = vld [vmem:[#allocation2 + $0xa4] ss:$16 sps:$4 sm:$0xff]   ;;  %v2298_v10 = vld [vmem:[#allocation2 + $0xac] ss:$16 sps:$4 sm:$0xff]  }
  0x42   :  { %326 = vmatprep.subr.bf16.mxu0 %v2290_v5  ;;  %367 = vmatprep.subr.bf16.mxu1 %v2292_v6  ;;  %v2300_v11 = vld [vmem:[#allocation2 + $0xa0] ss:$16 sps:$4 sm:$0xff]   ;;  %v2301_v12 = vld [vmem:[#allocation2 + $0xa8] ss:$16 sps:$4 sm:$0xff]   ;;  %v2302_v13 = vld [vmem:[#allocation2 + $0x84] ss:$16 sps:$4 sm:$0xff]  }
  0x43   :  { %v2304_v14 = vld [vmem:[#allocation2 + $0x8c] ss:$16 sps:$4 sm:$0xff]   ;;  %v2306_v15 = vld [vmem:[#allocation2 + $0x80] ss:$16 sps:$4 sm:$0xff]   ;;  %v2307_v16 = vld [vmem:[#allocation2 + $0x88] ss:$16 sps:$4 sm:$0xff]  }
  0x44   :  { %v2308_v17 = vld [vmem:[#allocation2 + $0x64] ss:$16 sps:$4 sm:$0xff]   ;;  %v2310_v18 = vld [vmem:[#allocation2 + $0x6c] ss:$16 sps:$4 sm:$0xff]   ;;  %v2312_v19 = vld [vmem:[#allocation2 + $0x60] ss:$16 sps:$4 sm:$0xff]  }
  0x45   :  { %327 = vmatpush1.bf16.msra.mxu0 %v2294_v7  ;;  %368 = vmatpush1.bf16.msra.mxu1 %v2295_v8  ;;  %v2313_v20 = vld [vmem:[#allocation2 + $0x68] ss:$16 sps:$4 sm:$0xff]   ;;  %v2314_v21 = vld [vmem:[#allocation2 + $0x44] ss:$16 sps:$4 sm:$0xff]   ;;  %v2316_v22 = vld [vmem:[#allocation2 + $0x4c] ss:$16 sps:$4 sm:$0xff]  }
  0x46   :  { %328 = vmatprep.subr.bf16.mxu0 %v2296_v9  ;;  %369 = vmatprep.subr.bf16.mxu1 %v2298_v10  ;;  %v2318_v23 = vld [vmem:[#allocation2 + $0x40] ss:$16 sps:$4 sm:$0xff]   ;;  %v2319_v24 = vld [vmem:[#allocation2 + $0x48] ss:$16 sps:$4 sm:$0xff]   ;;  %v2320_v25 = vld [vmem:[#allocation2 + $0x24] ss:$16 sps:$4 sm:$0xff]  }
  0x47   :  { %v2322_v26 = vld [vmem:[#allocation2 + $0x2c] ss:$16 sps:$4 sm:$0xff]   ;;  %v2324_v27 = vld [vmem:[#allocation2 + $0x20] ss:$16 sps:$4 sm:$0xff]   ;;  %v2325_v28 = vld [vmem:[#allocation2 + $0x28] ss:$16 sps:$4 sm:$0xff]  }
  0x48   :  { %v2326_v29 = vld [vmem:[#allocation2 + $0x4] ss:$16 sps:$4 sm:$0xff]   ;;  %v2328_v30 = vld [vmem:[#allocation2 + $0xc] ss:$16 sps:$4 sm:$0xff]   ;;  %v2330_v31 = vld [vmem:[#allocation2] ss:$16 sps:$4 sm:$0xff]  }
  0x49   :  { %329 = vmatpush1.bf16.msra.mxu0 %v2300_v11  ;;  %370 = vmatpush1.bf16.msra.mxu1 %v2301_v12  ;;  %v2331_v32 = vld [vmem:[#allocation2 + $0x8] ss:$16 sps:$4 sm:$0xff]   ;;  %v108_v33 = vld [vmem:[%s2873_s0] sm:$0xff]  ;;  %v2334_v34 = vld [vmem:[#allocation5 + $0x74] ss:$8 sps:$4 sm:$0xff]   ;;  %s1991_s13 = sshll.u32 %s2744_s12, 4  ;;  %s1992_s13 = int_to_ptr.vmem [resolvable:$true] %s1991_s13 }
  0x4a   :  { %330 = vmatprep.subr.bf16.mxu0 %v2302_v13  ;;  %371 = vmatprep.subr.bf16.mxu1 %v2304_v14  ;;  %v2337_v35 = vld [vmem:[#allocation5 + $0x174] ss:$8 sps:$4 sm:$0xff]   ;;  %v109_v36 = vpack.c.bf16 %v108_v33, %v108_v33  ;;  %v2332_v37 = vld [vmem:[#allocation5 + $0x70] ss:$8 sps:$4 sm:$0xff]   ;;  %v2340_v39 = vld [vmem:[#allocation5 + $0x64] ss:$8 sps:$4 sm:$0xff]   ;;  %p2709_p12 = scmp.lt.s32.totalorder %s1992_s13, %s1992_s13 }
  0x4b   :  { %v2335_v38 = vld [vmem:[#allocation5 + $0x170] ss:$8 sps:$4 sm:$0xff]   ;;  %v2343_v40 = vld [vmem:[#allocation5 + $0x164] ss:$8 sps:$4 sm:$0xff]   ;;  %v2338_v41 = vld [vmem:[#allocation5 + $0x60] ss:$8 sps:$4 sm:$0xff]  }
  0x4c   :  { %v2341_v42 = vld [vmem:[#allocation5 + $0x160] ss:$8 sps:$4 sm:$0xff]   ;;  %v2346_v43 = vld [vmem:[#allocation5 + $0x54] ss:$8 sps:$4 sm:$0xff]   ;;  %v2344_v45 = vld [vmem:[#allocation5 + $0x50] ss:$8 sps:$4 sm:$0xff]  }
  0x4d   :  { %331 = vmatpush1.bf16.msra.mxu0 %v2306_v15  ;;  %372 = vmatpush1.bf16.msra.mxu1 %v2307_v16  ;;  %v2349_v44 = vld [vmem:[#allocation5 + $0x154] ss:$8 sps:$4 sm:$0xff]   ;;  %v2347_v46 = vld [vmem:[#allocation5 + $0x150] ss:$8 sps:$4 sm:$0xff]   ;;  %v2352_v47 = vld [vmem:[#allocation5 + $0x44] ss:$8 sps:$4 sm:$0xff]  }
  0x4e   :  { %332 = vmatprep.subr.bf16.mxu0 %v2308_v17  ;;  %373 = vmatprep.subr.bf16.mxu1 %v2310_v18  ;;  %v2355_v48 = vld [vmem:[#allocation5 + $0x144] ss:$8 sps:$4 sm:$0xff]   ;;  %v2350_v49 = vld [vmem:[#allocation5 + $0x40] ss:$8 sps:$4 sm:$0xff]   ;;  %v2358_v51 = vld [vmem:[#allocation5 + $0x34] ss:$8 sps:$4 sm:$0xff]  }
  0x4f   :  { %v2353_v50 = vld [vmem:[#allocation5 + $0x140] ss:$8 sps:$4 sm:$0xff]   ;;  %v2361_v52 = vld [vmem:[#allocation5 + $0x134] ss:$8 sps:$4 sm:$0xff]   ;;  %v2356_v53 = vld [vmem:[#allocation5 + $0x30] ss:$8 sps:$4 sm:$0xff]  }
  0x50   :  { %v2359_v54 = vld [vmem:[#allocation5 + $0x130] ss:$8 sps:$4 sm:$0xff]   ;;  %v2364_v55 = vld [vmem:[#allocation5 + $0x24] ss:$8 sps:$4 sm:$0xff]   ;;  %v2362_v57 = vld [vmem:[#allocation5 + $0x20] ss:$8 sps:$4 sm:$0xff]  }
  0x51   :  { %333 = vmatpush1.bf16.msra.mxu0 %v2312_v19  ;;  %374 = vmatpush1.bf16.msra.mxu1 %v2313_v20  ;;  %v2367_v56 = vld [vmem:[#allocation5 + $0x124] ss:$8 sps:$4 sm:$0xff]   ;;  %v2365_v58 = vld [vmem:[#allocation5 + $0x120] ss:$8 sps:$4 sm:$0xff]   ;;  %v2370_v59 = vld [vmem:[#allocation5 + $0x14] ss:$8 sps:$4 sm:$0xff]  }
  0x52   :  { %334 = vmatprep.subr.bf16.mxu0 %v2314_v21  ;;  %375 = vmatprep.subr.bf16.mxu1 %v2316_v22  ;;  %v2373_v60 = vld [vmem:[#allocation5 + $0x114] ss:$8 sps:$4 sm:$0xff]   ;;  %v2368_v61 = vld [vmem:[#allocation5 + $0x10] ss:$8 sps:$4 sm:$0xff]   ;;  %v2376_v63 = vld [vmem:[#allocation5 + $0x4] ss:$8 sps:$4 sm:$0xff]  }
  0x53   :  { %v2371_v62 = vld [vmem:[#allocation5 + $0x110] ss:$8 sps:$4 sm:$0xff]   ;;  %v2379_v0 = vld [vmem:[#allocation5 + $0x104] ss:$8 sps:$4 sm:$0xff]   ;;  %v2374_v1 = vld [vmem:[#allocation5] ss:$8 sps:$4 sm:$0xff]  }
  0x54   :  { %v2377_v2 = vld [vmem:[#allocation5 + $0x100] ss:$8 sps:$4 sm:$0xff]   ;;  %v2382_v3 = vld [vmem:[#allocation5 + $0xf4] ss:$8 sps:$4 sm:$0xff]   ;;  %v2380_v5 = vld [vmem:[#allocation5 + $0xf0] ss:$8 sps:$4 sm:$0xff]  }
  0x55   :  { %335 = vmatpush1.bf16.msra.mxu0 %v2318_v23  ;;  %376 = vmatpush1.bf16.msra.mxu1 %v2319_v24  ;;  %v2385_v4 = vld [vmem:[#allocation5 + $0x1f4] ss:$8 sps:$4 sm:$0xff]   ;;  %v2383_v6 = vld [vmem:[#allocation5 + $0x1f0] ss:$8 sps:$4 sm:$0xff]   ;;  %v2388_v7 = vld [vmem:[#allocation5 + $0xe4] ss:$8 sps:$4 sm:$0xff]  }
  0x56   :  { %336 = vmatprep.subr.bf16.mxu0 %v2320_v25  ;;  %377 = vmatprep.subr.bf16.mxu1 %v2322_v26  ;;  %v2391_v8 = vld [vmem:[#allocation5 + $0x1e4] ss:$8 sps:$4 sm:$0xff]   ;;  %v2386_v9 = vld [vmem:[#allocation5 + $0xe0] ss:$8 sps:$4 sm:$0xff]   ;;  %v2394_v11 = vld [vmem:[#allocation5 + $0xd4] ss:$8 sps:$4 sm:$0xff]  }
  0x57   :  { %v2389_v10 = vld [vmem:[#allocation5 + $0x1e0] ss:$8 sps:$4 sm:$0xff]   ;;  %v2397_v12 = vld [vmem:[#allocation5 + $0x1d4] ss:$8 sps:$4 sm:$0xff]   ;;  %v2392_v13 = vld [vmem:[#allocation5 + $0xd0] ss:$8 sps:$4 sm:$0xff]  }
  0x58   :  { %v2395_v14 = vld [vmem:[#allocation5 + $0x1d0] ss:$8 sps:$4 sm:$0xff]   ;;  %v2400_v15 = vld [vmem:[#allocation5 + $0xc4] ss:$8 sps:$4 sm:$0xff]   ;;  %v2398_v17 = vld [vmem:[#allocation5 + $0xc0] ss:$8 sps:$4 sm:$0xff]  }
  0x59   :  { %337 = vmatpush1.bf16.msra.mxu0 %v2324_v27  ;;  %378 = vmatpush1.bf16.msra.mxu1 %v2325_v28  ;;  %v2403_v16 = vld [vmem:[#allocation5 + $0x1c4] ss:$8 sps:$4 sm:$0xff]   ;;  %v2401_v18 = vld [vmem:[#allocation5 + $0x1c0] ss:$8 sps:$4 sm:$0xff]   ;;  %v2406_v19 = vld [vmem:[#allocation5 + $0xb4] ss:$8 sps:$4 sm:$0xff]  }
  0x5a   :  { %338 = vmatprep.subr.bf16.mxu0 %v2326_v29  ;;  %379 = vmatprep.subr.bf16.mxu1 %v2328_v30  ;;  %v2409_v20 = vld [vmem:[#allocation5 + $0x1b4] ss:$8 sps:$4 sm:$0xff]   ;;  %v2404_v21 = vld [vmem:[#allocation5 + $0xb0] ss:$8 sps:$4 sm:$0xff]   ;;  %v2412_v23 = vld [vmem:[#allocation5 + $0xa4] ss:$8 sps:$4 sm:$0xff]  }
  0x5b   :  { %v2407_v22 = vld [vmem:[#allocation5 + $0x1b0] ss:$8 sps:$4 sm:$0xff]   ;;  %v2415_v24 = vld [vmem:[#allocation5 + $0x1a4] ss:$8 sps:$4 sm:$0xff]   ;;  %v2410_v25 = vld [vmem:[#allocation5 + $0xa0] ss:$8 sps:$4 sm:$0xff]  }
  0x5c   :  { %v2413_v26 = vld [vmem:[#allocation5 + $0x1a0] ss:$8 sps:$4 sm:$0xff]   ;;  %v2418_v27 = vld [vmem:[#allocation5 + $0x94] ss:$8 sps:$4 sm:$0xff]   ;;  %v2416_v29 = vld [vmem:[#allocation5 + $0x90] ss:$8 sps:$4 sm:$0xff]  }
  0x5d   :  { %339 = vmatpush1.bf16.msra.mxu0 %v2330_v31  ;;  %380 = vmatpush1.bf16.msra.mxu1 %v2331_v32  ;;  %v2421_v28 = vld [vmem:[#allocation5 + $0x194] ss:$8 sps:$4 sm:$0xff]   ;;  %v2419_v30 = vld [vmem:[#allocation5 + $0x190] ss:$8 sps:$4 sm:$0xff]   ;;  %v2424_v31 = vld [vmem:[#allocation5 + $0x84] ss:$8 sps:$4 sm:$0xff]  }
  0x5e   :  { %810 = vmatprep.subr.bf16.mxu0 %v2334_v34  ;;  %851 = vmatprep.subr.bf16.mxu1 %v2337_v35  ;;  %v2427_v32 = vld [vmem:[#allocation5 + $0x184] ss:$8 sps:$4 sm:$0xff]   ;;  %v2422_v33 = vld [vmem:[#allocation5 + $0x80] ss:$8 sps:$4 sm:$0xff]   ;;  %v2430_v35 = vld [vmem:[#allocation7 + $0x74] ss:$8 sps:$4 sm:$0xff]  }
  0x5f   :  { %v2425_v34 = vld [vmem:[#allocation5 + $0x180] ss:$8 sps:$4 sm:$0xff]   ;;  %s2704_s3 = scalar_lea.vmem %s1992_s13, 128 }
  0x60   :  { %357 = vmatmul.mubr.bf16.vlgmr.msra.gmra.mxu0 %v109_v36  ;;  %398 = vmatmul.mubr.bf16.vlgmr.msra.gmra.mxu1 %v109_v36  ;;  %v144_v36 = vlaneseq  ;;  %p2705_p11 = scmp.ne.s32.totalorder %s1992_s13, %s2704_s3  ;;  %p2710_p13 = scmp.lt.s32.totalorder %s2704_s3, %s2704_s3 }
  0x61   :  { %811 = vmatpush1.bf16.msra.mxu0 %v2332_v37  ;;  %852 = vmatpush1.bf16.msra.mxu1 %v2335_v38 }
  0x62   :  { %812 = vmatprep.subr.bf16.mxu0 %v2340_v39  ;;  %853 = vmatprep.subr.bf16.mxu1 %v2343_v40  ;;  %v2829_v37 = vshrl.u32 %v144_v36, 7  ;;  %v142_v40 = vld [vmem:[%s2875_s2] sm:$0xf]  ;;  %v2481_v36 = vld [vmem:[#allocation8 + $0xec] ss:$16 sps:$4 sm:$0xff]   ;;  %p2711_p0 = por %p2710_p13, %p2709_p12 }
  0x64   :  { %v2832_v38 = vsub.s32 0, %v2829_v37  ;;  %v154_v39 = vsub.s32 2, %v2829_v37  ;;  %p2712_p1 = pnand %p2711_p0, %p2705_p11 }
  0x65   :  { %813 = vmatpush1.bf16.msra.mxu0 %v2338_v41  ;;  %854 = vmatpush1.bf16.msra.mxu1 %v2341_v42  ;;  %v2839_v41 = vsub.s32 1, %v2829_v37  ;;  %v158_v42 = vsub.s32 3, %v2829_v37 }
  0x66   :  { %814 = vmatprep.subr.bf16.mxu0 %v2346_v43  ;;  %855 = vmatprep.subr.bf16.mxu1 %v2349_v44  ;;  %v147_v43 = vrot.slane %v142_v40, %v2832_v38  ;;  %v155_v44 = vrot.slane %v142_v40, %v154_v39 }
  0x69   :  { %815 = vmatpush1.bf16.msra.mxu0 %v2344_v45  ;;  %856 = vmatpush1.bf16.msra.mxu1 %v2347_v46  ;;  %v151_v45 = vrot.slane %v142_v40, %v2839_v41  ;;  %v159_v46 = vrot.slane %v142_v40, %v158_v42  ;;  %v2484_v40 = vld [vmem:[#allocation8 + $0xc4] ss:$16 sps:$4 sm:$0xff]  }
  0x6a   :  { %816 = vmatprep.subr.bf16.mxu0 %v2352_v47  ;;  %857 = vmatprep.subr.bf16.mxu1 %v2355_v48 }
  0x6d   :  { %817 = vmatpush1.bf16.msra.mxu0 %v2350_v49  ;;  %858 = vmatpush1.bf16.msra.mxu1 %v2353_v50 }
  0x6e   :  { %818 = vmatprep.subr.bf16.mxu0 %v2358_v51  ;;  %859 = vmatprep.subr.bf16.mxu1 %v2361_v52 }
  0x71   :  { %819 = vmatpush1.bf16.msra.mxu0 %v2356_v53  ;;  %860 = vmatpush1.bf16.msra.mxu1 %v2359_v54 }
  0x72   :  { %820 = vmatprep.subr.bf16.mxu0 %v2364_v55  ;;  %861 = vmatprep.subr.bf16.mxu1 %v2367_v56 }
  0x75   :  { %821 = vmatpush1.bf16.msra.mxu0 %v2362_v57  ;;  %862 = vmatpush1.bf16.msra.mxu1 %v2365_v58 }
  0x76   :  { %822 = vmatprep.subr.bf16.mxu0 %v2370_v59  ;;  %863 = vmatprep.subr.bf16.mxu1 %v2373_v60 }
  0x79   :  { %823 = vmatpush1.bf16.msra.mxu0 %v2368_v61  ;;  %864 = vmatpush1.bf16.msra.mxu1 %v2371_v62 }
  0x7a   :  { %824 = vmatprep.subr.bf16.mxu0 %v2376_v63  ;;  %865 = vmatprep.subr.bf16.mxu1 %v2379_v0 }
  0x7d   :  { %825 = vmatpush1.bf16.msra.mxu0 %v2374_v1  ;;  %866 = vmatpush1.bf16.msra.mxu1 %v2377_v2  ;;  %v2428_v2 = vld [vmem:[#allocation7 + $0x70] ss:$8 sps:$4 sm:$0xff]  }
  0x7e   :  { %826 = vmatprep.subr.bf16.mxu0 %v2382_v3  ;;  %867 = vmatprep.subr.bf16.mxu1 %v2385_v4  ;;  %v2433_v4 = vld [vmem:[#allocation7 + $0x64] ss:$8 sps:$4 sm:$0xff]  }
  0x81   :  { %827 = vmatpush2.bf16.msra.mxu0 %v2380_v5  ;;  %868 = vmatpush2.bf16.msra.mxu1 %v2383_v6  ;;  %v2431_v5 = vld [vmem:[#allocation7 + $0x60] ss:$8 sps:$4 sm:$0xff]   ;;  %v2436_v6 = vld [vmem:[#allocation7 + $0x54] ss:$8 sps:$4 sm:$0xff]  }
  0x82   :  { %828 = vmatprep.subr.bf16.mxu0 %v2388_v7  ;;  %869 = vmatprep.subr.bf16.mxu1 %v2391_v8  ;;  %v2434_v7 = vld [vmem:[#allocation7 + $0x50] ss:$8 sps:$4 sm:$0xff]   ;;  %v2439_v8 = vld [vmem:[#allocation7 + $0x44] ss:$8 sps:$4 sm:$0xff]  }
  0x85   :  { %829 = vmatpush2.bf16.msra.mxu0 %v2386_v9  ;;  %870 = vmatpush2.bf16.msra.mxu1 %v2389_v10  ;;  %v2437_v9 = vld [vmem:[#allocation7 + $0x40] ss:$8 sps:$4 sm:$0xff]   ;;  %v2442_v10 = vld [vmem:[#allocation7 + $0x34] ss:$8 sps:$4 sm:$0xff]  }
  0x86   :  { %830 = vmatprep.subr.bf16.mxu0 %v2394_v11  ;;  %871 = vmatprep.subr.bf16.mxu1 %v2397_v12  ;;  %v2440_v11 = vld [vmem:[#allocation7 + $0x30] ss:$8 sps:$4 sm:$0xff]   ;;  %v2445_v12 = vld [vmem:[#allocation7 + $0x24] ss:$8 sps:$4 sm:$0xff]  }
  0x89   :  { %831 = vmatpush2.bf16.msra.mxu0 %v2392_v13  ;;  %872 = vmatpush2.bf16.msra.mxu1 %v2395_v14  ;;  %v2443_v13 = vld [vmem:[#allocation7 + $0x20] ss:$8 sps:$4 sm:$0xff]   ;;  %v2448_v14 = vld [vmem:[#allocation7 + $0x14] ss:$8 sps:$4 sm:$0xff]  }
  0x8a   :  { %832 = vmatprep.subr.bf16.mxu0 %v2400_v15  ;;  %873 = vmatprep.subr.bf16.mxu1 %v2403_v16  ;;  %v2446_v15 = vld [vmem:[#allocation7 + $0x10] ss:$8 sps:$4 sm:$0xff]   ;;  %v2451_v16 = vld [vmem:[#allocation7 + $0x4] ss:$8 sps:$4 sm:$0xff]  }
  0x8d   :  { %833 = vmatpush2.bf16.msra.mxu0 %v2398_v17  ;;  %874 = vmatpush2.bf16.msra.mxu1 %v2401_v18  ;;  %v2449_v17 = vld [vmem:[#allocation7] ss:$8 sps:$4 sm:$0xff]   ;;  %v2454_v18 = vld [vmem:[#allocation7 + $0xf4] ss:$8 sps:$4 sm:$0xff]  }
  0x8e   :  { %834 = vmatprep.subr.bf16.mxu0 %v2406_v19  ;;  %875 = vmatprep.subr.bf16.mxu1 %v2409_v20  ;;  %v2452_v19 = vld [vmem:[#allocation7 + $0xf0] ss:$8 sps:$4 sm:$0xff]   ;;  %v2457_v20 = vld [vmem:[#allocation7 + $0xe4] ss:$8 sps:$4 sm:$0xff]  }
  0x91   :  { %835 = vmatpush2.bf16.msra.mxu0 %v2404_v21  ;;  %876 = vmatpush2.bf16.msra.mxu1 %v2407_v22  ;;  %v2455_v21 = vld [vmem:[#allocation7 + $0xe0] ss:$8 sps:$4 sm:$0xff]   ;;  %v2460_v22 = vld [vmem:[#allocation7 + $0xd4] ss:$8 sps:$4 sm:$0xff]  }
  0x92   :  { %836 = vmatprep.subr.bf16.mxu0 %v2412_v23  ;;  %877 = vmatprep.subr.bf16.mxu1 %v2415_v24  ;;  %v2458_v23 = vld [vmem:[#allocation7 + $0xd0] ss:$8 sps:$4 sm:$0xff]   ;;  %v2463_v24 = vld [vmem:[#allocation7 + $0xc4] ss:$8 sps:$4 sm:$0xff]  }
  0x95   :  { %837 = vmatpush2.bf16.msra.mxu0 %v2410_v25  ;;  %878 = vmatpush2.bf16.msra.mxu1 %v2413_v26  ;;  %v2461_v25 = vld [vmem:[#allocation7 + $0xc0] ss:$8 sps:$4 sm:$0xff]   ;;  %v2466_v26 = vld [vmem:[#allocation7 + $0xb4] ss:$8 sps:$4 sm:$0xff]  }
  0x96   :  { %838 = vmatprep.subr.bf16.mxu0 %v2418_v27  ;;  %879 = vmatprep.subr.bf16.mxu1 %v2421_v28  ;;  %v2464_v27 = vld [vmem:[#allocation7 + $0xb0] ss:$8 sps:$4 sm:$0xff]   ;;  %v2469_v28 = vld [vmem:[#allocation7 + $0xa4] ss:$8 sps:$4 sm:$0xff]  }
  0x99   :  { %839 = vmatpush2.bf16.msra.mxu0 %v2416_v29  ;;  %880 = vmatpush2.bf16.msra.mxu1 %v2419_v30  ;;  %v2467_v29 = vld [vmem:[#allocation7 + $0xa0] ss:$8 sps:$4 sm:$0xff]   ;;  %v2472_v30 = vld [vmem:[#allocation7 + $0x94] ss:$8 sps:$4 sm:$0xff]  }
  0x9a   :  { %840 = vmatprep.subr.bf16.mxu0 %v2424_v31  ;;  %881 = vmatprep.subr.bf16.mxu1 %v2427_v32  ;;  %v2470_v31 = vld [vmem:[#allocation7 + $0x90] ss:$8 sps:$4 sm:$0xff]   ;;  %v2475_v32 = vld [vmem:[#allocation7 + $0x84] ss:$8 sps:$4 sm:$0xff]  }
  0x9d   :  { %841 = vmatpush2.bf16.msra.mxu0 %v2422_v33  ;;  %882 = vmatpush2.bf16.msra.mxu1 %v2425_v34  ;;  %v2473_v33 = vld [vmem:[#allocation7 + $0x80] ss:$8 sps:$4 sm:$0xff]  }
  0x9e   :  { %1100 = vmatprep.subr.bf16.mxu0 %v2430_v35  ;;  %v2476_v34 = vld [vmem:[#allocation8 + $0xe0] ss:$16 sps:$4 sm:$0xff]   ;;  %v2478_v35 = vld [vmem:[#allocation8 + $0xe4] ss:$16 sps:$4 sm:$0xff]  }
  0x9f   :  { %1551 = vmatprep.subr.bf16.mxu1 %v2478_v35  ;;  %v2515_v35 = vld [vmem:[#allocation8 + $0x28] ss:$16 sps:$4 sm:$0xff]  }
 0x120   :  { %v358_v47 = vpop.f32.mrf.mxu0  ;;  %v399_v48 = vpop.f32.mrf.mxu1 }
 0x121   :  { %v359_v49 = vadd.f32 %v358_v47, %v147_v43  ;;  %v400_v50 = vadd.f32 %v399_v48, %v155_v44  ;;  %v2482_v43 = vld [vmem:[#allocation8 + $0xc0] ss:$16 sps:$4 sm:$0xff]   ;;  %v2490_v44 = vld [vmem:[#allocation8 + $0xa4] ss:$16 sps:$4 sm:$0xff]  }
 0x122   :  { %v360_v51 = vpop.f32.mrf.mxu0  ;;  %v401_v52 = vpop.f32.mrf.mxu1  ;;  %v2494_v47 = vld [vmem:[#allocation8 + $0x80] ss:$16 sps:$4 sm:$0xff]   ;;  %v2502_v48 = vld [vmem:[#allocation8 + $0x64] ss:$16 sps:$4 sm:$0xff]  }
 0x123   :  { %v408_v53 = vmax.f32 %v400_v50, 0.0  ;;  %v361_v54 = vadd.f32 %v360_v51, %v151_v45  ;;  %v402_v55 = vadd.f32 %v401_v52, %v159_v46  ;;  %v406_v56 = vmax.f32 %v359_v49, 0.0  ;;  %v2488_v45 = vld [vmem:[#allocation8 + $0xa0] ss:$16 sps:$4 sm:$0xff]   ;;  %v2496_v46 = vld [vmem:[#allocation8 + $0x84] ss:$16 sps:$4 sm:$0xff]  }
 0x124   :  { %v362_v57 = vpop.f32.mrf.mxu0  ;;  %v403_v58 = vpop.f32.mrf.mxu1  ;;  %v2500_v49 = vld [vmem:[#allocation8 + $0x60] ss:$16 sps:$4 sm:$0xff]   ;;  %v2508_v50 = vld [vmem:[#allocation8 + $0x44] ss:$16 sps:$4 sm:$0xff]  }
 0x125   :  { %v407_v59 = vmax.f32 %v361_v54, 0.0  ;;  %v409_v60 = vmax.f32 %v402_v55, 0.0  ;;  %v412_v61 = vpack.c.bf16 %v408_v53, %v408_v53  ;;  %v410_v3 = vpack.c.bf16 %v406_v56, %v406_v56  ;;  %v2506_v51 = vld [vmem:[#allocation8 + $0x40] ss:$16 sps:$4 sm:$0xff]   ;;  %v2514_v52 = vld [vmem:[#allocation8 + $0x24] ss:$16 sps:$4 sm:$0xff]  }
 0x126   :  { %v363_v62 = vpop.f32.mrf.mxu0  ;;  %v404_v63 = vpop.f32.mrf.mxu1  ;;  %v2512_v53 = vld [vmem:[#allocation8 + $0x20] ss:$16 sps:$4 sm:$0xff]   ;;  %v2520_v54 = vld [vmem:[#allocation8 + $0x4] ss:$16 sps:$4 sm:$0xff]  }
 0x127   :  { %v411_v0 = vpack.c.bf16 %v407_v59, %v407_v59  ;;  %v413_v1 = vpack.c.bf16 %v409_v60, %v409_v60  ;;  %v2518_v55 = vld [vmem:[#allocation8] ss:$16 sps:$4 sm:$0xff]   ;;  %v2526_v56 = vld [vmem:[#allocation8 + $0x1e4] ss:$16 sps:$4 sm:$0xff]  }
 0x128   :  { %v2524_v57 = vld [vmem:[#allocation8 + $0x1e0] ss:$16 sps:$4 sm:$0xff]   ;;  %v2532_v58 = vld [vmem:[#allocation8 + $0x1c4] ss:$16 sps:$4 sm:$0xff]  }
 0x129   :  { %842 = vmatprep.mubr.bf16.mxu0 %v411_v0  ;;  %883 = vmatprep.mubr.bf16.mxu1 %v413_v1  ;;  %v2530_v59 = vld [vmem:[#allocation8 + $0x1c0] ss:$16 sps:$4 sm:$0xff]   ;;  %v2538_v60 = vld [vmem:[#allocation8 + $0x1a4] ss:$16 sps:$4 sm:$0xff]  }
 0x12a   :  { %843 = vmatmul.mubr.bf16.vlgmr.msra.gmra.mxu0 %v410_v3  ;;  %884 = vmatmul.mubr.bf16.vlgmr.msra.gmra.mxu1 %v412_v61  ;;  %v2536_v61 = vld [vmem:[#allocation8 + $0x1a0] ss:$16 sps:$4 sm:$0xff]   ;;  %v2544_v62 = vld [vmem:[#allocation8 + $0x184] ss:$16 sps:$4 sm:$0xff]  }
 0x12b   :  { %1101 = vmatpush1.bf16.msra.mxu0 %v2428_v2  ;;  %1552 = vmatpush1.bf16.msra.mxu1 %v2476_v34  ;;  %v2542_v63 = vld [vmem:[#allocation8 + $0x180] ss:$16 sps:$4 sm:$0xff]   ;;  %v2550_v0 = vld [vmem:[#allocation8 + $0x164] ss:$16 sps:$4 sm:$0xff]   ;;  %v2517_v34 = vld [vmem:[#allocation8 + $0x2c] ss:$16 sps:$4 sm:$0xff]  }
 0x12c   :  { %1102 = vmatprep.subr.bf16.mxu0 %v2433_v4  ;;  %1553 = vmatprep.subr.bf16.mxu1 %v2484_v40  ;;  %v2548_v1 = vld [vmem:[#allocation8 + $0x160] ss:$16 sps:$4 sm:$0xff]   ;;  %v2556_v2 = vld [vmem:[#allocation8 + $0x144] ss:$16 sps:$4 sm:$0xff]   ;;  %v2521_v40 = vld [vmem:[#allocation8 + $0x8] ss:$16 sps:$4 sm:$0xff]  }
 0x12d   :  { %v2554_v3 = vld [vmem:[#allocation8 + $0x140] ss:$16 sps:$4 sm:$0xff]  }
 0x12e   :  { %v478_v4 = vld [vmem:[%s2877_s4] sm:$0x3] }
 0x12f   :  { %1103 = vmatpush1.bf16.msra.mxu0 %v2431_v5  ;;  %1554 = vmatpush1.bf16.msra.mxu1 %v2482_v43  ;;  %v483_v5 = vrot.slane %v478_v4, %v2832_v38  ;;  %v2529_v43 = vld [vmem:[#allocation8 + $0x1ec] ss:$16 sps:$4 sm:$0xff]  }
 0x130   :  { %1104 = vmatprep.subr.bf16.mxu0 %v2436_v6  ;;  %1555 = vmatprep.subr.bf16.mxu1 %v2490_v44  ;;  %v487_v6 = vrot.slane %v478_v4, %v2839_v41  ;;  %v2527_v44 = vld [vmem:[#allocation8 + $0x1e8] ss:$16 sps:$4 sm:$0xff]  }
 0x133   :  { %1105 = vmatpush1.bf16.msra.mxu0 %v2434_v7  ;;  %1556 = vmatpush1.bf16.msra.mxu1 %v2488_v45  ;;  %v2535_v45 = vld [vmem:[#allocation8 + $0x1cc] ss:$16 sps:$4 sm:$0xff]  }
 0x134   :  { %1106 = vmatprep.subr.bf16.mxu0 %v2439_v8  ;;  %1557 = vmatprep.subr.bf16.mxu1 %v2496_v46  ;;  %v2533_v46 = vld [vmem:[#allocation8 + $0x1c8] ss:$16 sps:$4 sm:$0xff]  }
 0x137   :  { %1107 = vmatpush1.bf16.msra.mxu0 %v2437_v9  ;;  %1558 = vmatpush1.bf16.msra.mxu1 %v2494_v47  ;;  %v2541_v47 = vld [vmem:[#allocation8 + $0x1ac] ss:$16 sps:$4 sm:$0xff]  }
 0x138   :  { %1108 = vmatprep.subr.bf16.mxu0 %v2442_v10  ;;  %1559 = vmatprep.subr.bf16.mxu1 %v2502_v48  ;;  %v2539_v48 = vld [vmem:[#allocation8 + $0x1a8] ss:$16 sps:$4 sm:$0xff]  }
 0x13b   :  { %1109 = vmatpush1.bf16.msra.mxu0 %v2440_v11  ;;  %1560 = vmatpush1.bf16.msra.mxu1 %v2500_v49  ;;  %v2547_v49 = vld [vmem:[#allocation8 + $0x18c] ss:$16 sps:$4 sm:$0xff]  }
 0x13c   :  { %1110 = vmatprep.subr.bf16.mxu0 %v2445_v12  ;;  %1561 = vmatprep.subr.bf16.mxu1 %v2508_v50  ;;  %v2545_v50 = vld [vmem:[#allocation8 + $0x188] ss:$16 sps:$4 sm:$0xff]  }
 0x13f   :  { %1111 = vmatpush1.bf16.msra.mxu0 %v2443_v13  ;;  %1562 = vmatpush1.bf16.msra.mxu1 %v2506_v51  ;;  %v2553_v51 = vld [vmem:[#allocation8 + $0x16c] ss:$16 sps:$4 sm:$0xff]  }
 0x140   :  { %1112 = vmatprep.subr.bf16.mxu0 %v2448_v14  ;;  %1563 = vmatprep.subr.bf16.mxu1 %v2514_v52  ;;  %v2551_v52 = vld [vmem:[#allocation8 + $0x168] ss:$16 sps:$4 sm:$0xff]  }
 0x143   :  { %1113 = vmatpush1.bf16.msra.mxu0 %v2446_v15  ;;  %1564 = vmatpush1.bf16.msra.mxu1 %v2512_v53  ;;  %v2559_v53 = vld [vmem:[#allocation8 + $0x14c] ss:$16 sps:$4 sm:$0xff]  }
 0x144   :  { %1114 = vmatprep.subr.bf16.mxu0 %v2451_v16  ;;  %1565 = vmatprep.subr.bf16.mxu1 %v2520_v54  ;;  %v2557_v54 = vld [vmem:[#allocation8 + $0x148] ss:$16 sps:$4 sm:$0xff]  }
 0x147   :  { %1115 = vmatpush1.bf16.msra.mxu0 %v2449_v17  ;;  %1566 = vmatpush1.bf16.msra.mxu1 %v2518_v55  ;;  %v2562_v55 = vld [vmem:[#allocation8 + $0x124] ss:$16 sps:$4 sm:$0xff]  }
 0x148   :  { %1116 = vmatprep.subr.bf16.mxu0 %v2454_v18  ;;  %1567 = vmatprep.subr.bf16.mxu1 %v2526_v56  ;;  %v2565_v56 = vld [vmem:[#allocation8 + $0x12c] ss:$16 sps:$4 sm:$0xff]  }
 0x14b   :  { %1117 = vmatpush2.bf16.msra.mxu0 %v2452_v19  ;;  %1568 = vmatpush2.bf16.msra.mxu1 %v2524_v57  ;;  %v2560_v57 = vld [vmem:[#allocation8 + $0x120] ss:$16 sps:$4 sm:$0xff]  }
 0x14c   :  { %1118 = vmatprep.subr.bf16.mxu0 %v2457_v20  ;;  %1569 = vmatprep.subr.bf16.mxu1 %v2532_v58  ;;  %v2563_v58 = vld [vmem:[#allocation8 + $0x128] ss:$16 sps:$4 sm:$0xff]  }
 0x14f   :  { %1119 = vmatpush2.bf16.msra.mxu0 %v2455_v21  ;;  %1570 = vmatpush2.bf16.msra.mxu1 %v2530_v59  ;;  %v2568_v59 = vld [vmem:[#allocation8 + $0x104] ss:$16 sps:$4 sm:$0xff]  }
 0x150   :  { %1120 = vmatprep.subr.bf16.mxu0 %v2460_v22  ;;  %1571 = vmatprep.subr.bf16.mxu1 %v2538_v60  ;;  %v2479_v22 = vld [vmem:[#allocation8 + $0xe8] ss:$16 sps:$4 sm:$0xff]   ;;  %v2571_v60 = vld [vmem:[#allocation8 + $0x10c] ss:$16 sps:$4 sm:$0xff]  }
 0x153   :  { %1121 = vmatpush2.bf16.msra.mxu0 %v2458_v23  ;;  %1572 = vmatpush2.bf16.msra.mxu1 %v2536_v61  ;;  %v2566_v61 = vld [vmem:[#allocation8 + $0x100] ss:$16 sps:$4 sm:$0xff]  }
 0x154   :  { %1122 = vmatprep.subr.bf16.mxu0 %v2463_v24  ;;  %1573 = vmatprep.subr.bf16.mxu1 %v2544_v62  ;;  %v2487_v24 = vld [vmem:[#allocation8 + $0xcc] ss:$16 sps:$4 sm:$0xff]   ;;  %v2569_v62 = vld [vmem:[#allocation8 + $0x108] ss:$16 sps:$4 sm:$0xff]  }
 0x157   :  { %1123 = vmatpush2.bf16.msra.mxu0 %v2461_v25  ;;  %1574 = vmatpush2.bf16.msra.mxu1 %v2542_v63  ;;  %v2485_v25 = vld [vmem:[#allocation8 + $0xc8] ss:$16 sps:$4 sm:$0xff]  }
 0x158   :  { %1124 = vmatprep.subr.bf16.mxu0 %v2466_v26  ;;  %1575 = vmatprep.subr.bf16.mxu1 %v2550_v0  ;;  %v2493_v26 = vld [vmem:[#allocation8 + $0xac] ss:$16 sps:$4 sm:$0xff]   ;;  %v928_v0 = vld [vmem:[%s2879_s6] sm:$0x3] }
 0x159   :  { %v2572_v63 = vld [vmem:[#allocation10 + $0x78] sm:$0xff]  }
 0x15b   :  { %1125 = vmatpush2.bf16.msra.mxu0 %v2464_v27  ;;  %1576 = vmatpush2.bf16.msra.mxu1 %v2548_v1  ;;  %v2491_v27 = vld [vmem:[#allocation8 + $0xa8] ss:$16 sps:$4 sm:$0xff]   ;;  %v933_v1 = vrot.slane %v928_v0, %v2832_v38 }
 0x15c   :  { %1126 = vmatprep.subr.bf16.mxu0 %v2469_v28  ;;  %1577 = vmatprep.subr.bf16.mxu1 %v2556_v2  ;;  %v2499_v28 = vld [vmem:[#allocation8 + $0x8c] ss:$16 sps:$4 sm:$0xff]   ;;  %v937_v2 = vrot.slane %v928_v0, %v2839_v41 }
 0x15d   :  { %v2600_v0 = vld [vmem:[#allocation10 + $0xc8] sm:$0xff]  }
 0x15f   :  { %1127 = vmatpush2.bf16.msra.mxu0 %v2467_v29  ;;  %1578 = vmatpush2.bf16.msra.mxu1 %v2554_v3  ;;  %v2497_v29 = vld [vmem:[#allocation8 + $0x88] ss:$16 sps:$4 sm:$0xff]  }
 0x160   :  { %1128 = vmatprep.subr.bf16.mxu0 %v2472_v30  ;;  %v2505_v30 = vld [vmem:[#allocation8 + $0x6c] ss:$16 sps:$4 sm:$0xff]   ;;  %1579 = vmatprep.subr.bf16.mxu1 %v2562_v55 }
 0x161   :  { %v2592_v55 = vld [vmem:[#allocation10 + $0xe8] sm:$0xff]  }
 0x163   :  { %1129 = vmatpush2.bf16.msra.mxu0 %v2470_v31  ;;  %v2503_v31 = vld [vmem:[#allocation8 + $0x68] ss:$16 sps:$4 sm:$0xff]   ;;  %1580 = vmatpush2.bf16.msra.mxu1 %v2560_v57  ;;  %v2594_v57 = vld [vmem:[#allocation10 + $0xe0] sm:$0xff]  }
 0x164   :  { %1130 = vmatprep.subr.bf16.mxu0 %v2475_v32  ;;  %v2511_v32 = vld [vmem:[#allocation8 + $0x4c] ss:$16 sps:$4 sm:$0xff]   ;;  %1581 = vmatprep.subr.bf16.mxu1 %v2568_v59 }
 0x165   :  { %v2596_v59 = vld [vmem:[#allocation10 + $0xd8] sm:$0xff]  }
 0x167   :  { %1131 = vmatpush2.bf16.msra.mxu0 %v2473_v33  ;;  %v2509_v33 = vld [vmem:[#allocation8 + $0x48] ss:$16 sps:$4 sm:$0xff]   ;;  %1582 = vmatpush2.bf16.msra.mxu1 %v2566_v61  ;;  %v2598_v61 = vld [vmem:[#allocation10 + $0xd0] sm:$0xff]  }
 0x168   :  { %1592 = vmatprep.subr.bf16.mxu0 %v2481_v36  ;;  %v2523_v36 = vld [vmem:[#allocation8 + $0xc] ss:$16 sps:$4 sm:$0xff]   ;;  %2227 = vmatprep.subr.bf16.mxu1 %v2572_v63 }
 0x1ea   :  { %v844_v7 = vpop.f32.mrf.mxu0  ;;  %v885_v8 = vpop.f32.mrf.mxu1 }
 0x1eb   :  { %v845_v9 = vadd.f32 %v844_v7, %v483_v5 }
 0x1ec   :  { %v846_v10 = vpop.f32.mrf.mxu0  ;;  %v887_v11 = vpop.f32.mrf.mxu1 }
 0x1ed   :  { %v886_v12 = vadd.f32 %v885_v8, %v845_v9  ;;  %v847_v13 = vadd.f32 %v846_v10, %v487_v6 }
 0x1ee   :  { %v848_v14 = vpop.f32.mrf.mxu0  ;;  %v889_v15 = vpop.f32.mrf.mxu1 }
 0x1ef   :  { %v888_v16 = vadd.f32 %v887_v11, %v847_v13  ;;  %v892_v17 = vmax.f32 %v886_v12, 0.0  ;;  %v2573_v12 = vld [vmem:[#allocation10 + $0x38] sm:$0xff]   ;;  %v2574_v14 = vld [vmem:[#allocation10 + $0x70] sm:$0xff]  }
 0x1f0   :  { %v849_v18 = vpop.f32.mrf.mxu0  ;;  %v890_v19 = vpop.f32.mrf.mxu1  ;;  %v2575_v15 = vld [vmem:[#allocation10 + $0x30] sm:$0xff]  }
 0x1f1   :  { %v893_v20 = vmax.f32 %v888_v16, 0.0  ;;  %v894_v23 = vpack.c.bf16 %v892_v17, %v892_v17  ;;  %v2576_v16 = vld [vmem:[#allocation10 + $0x68] sm:$0xff]   ;;  %v2578_v18 = vld [vmem:[#allocation10 + $0x60] sm:$0xff]  }
 0x1f2   :  { %v2577_v17 = vld [vmem:[#allocation10 + $0x28] sm:$0xff]   ;;  %v2579_v19 = vld [vmem:[#allocation10 + $0x20] sm:$0xff]  }
 0x1f3   :  { %v895_v21 = vpack.c.bf16 %v893_v20, %v893_v20  ;;  %v2580_v20 = vld [vmem:[#allocation10 + $0x58] sm:$0xff]  }
 0x1f5   :  { %1132 = vmatprep.mubr.bf16.mxu0 %v895_v21  ;;  %v2581_v21 = vld [vmem:[#allocation10 + $0x18] sm:$0xff]  }
 0x1f6   :  { %1133 = vmatmul.mubr.bf16.vlgmr.msra.gmra.mxu0 %v894_v23  ;;  %v2583_v23 = vld [vmem:[#allocation10 + $0x10] sm:$0xff]  }
 0x1f7   :  { %1593 = vmatpush1.bf16.msra.mxu0 %v2479_v22  ;;  %v2582_v22 = vld [vmem:[#allocation10 + $0x50] sm:$0xff]  }
 0x1f8   :  { %1594 = vmatprep.subr.bf16.mxu0 %v2487_v24  ;;  %v2584_v24 = vld [vmem:[#allocation10 + $0x48] sm:$0xff]  }
 0x1fb   :  { %1595 = vmatpush1.bf16.msra.mxu0 %v2485_v25  ;;  %v2585_v25 = vld [vmem:[#allocation10 + $0x8] sm:$0xff]  }
 0x1fc   :  { %1596 = vmatprep.subr.bf16.mxu0 %v2493_v26  ;;  %v2586_v26 = vld [vmem:[#allocation10 + $0x40] sm:$0xff]  }
 0x1ff   :  { %1597 = vmatpush1.bf16.msra.mxu0 %v2491_v27  ;;  %v2587_v27 = vld [vmem:[#allocation10] sm:$0xff]  }
 0x200   :  { %1598 = vmatprep.subr.bf16.mxu0 %v2499_v28  ;;  %v2588_v28 = vld [vmem:[#allocation10 + $0xf8] sm:$0xff]  }
 0x203   :  { %1599 = vmatpush1.bf16.msra.mxu0 %v2497_v29  ;;  %v1209_v29 = vld [vmem:[%s2881_s8] sm:$0xf] }
 0x204   :  { %1600 = vmatprep.subr.bf16.mxu0 %v2505_v30  ;;  %v1214_v30 = vrot.slane %v1209_v29, %v2832_v38  ;;  %v1222_v63 = vrot.slane %v1209_v29, %v154_v39  ;;  %v2194_v39 = vld [vmem:[%s2883_s10] ss:$0 sm:$0xff] }
 0x207   :  { %1601 = vmatpush1.bf16.msra.mxu0 %v2503_v31  ;;  %v1218_v31 = vrot.slane %v1209_v29, %v2839_v41 }
 0x208   :  { %1602 = vmatprep.subr.bf16.mxu0 %v2511_v32  ;;  %v1226_v32 = vrot.slane %v1209_v29, %v158_v42  ;;  %v2591_v42 = vld [vmem:[#allocation10 + $0xb0] sm:$0xff]  }
 0x20b   :  { %1603 = vmatpush1.bf16.msra.mxu0 %v2509_v33 }
 0x20c   :  { %1604 = vmatprep.subr.bf16.mxu0 %v2517_v34 }
 0x20f   :  { %1605 = vmatpush1.bf16.msra.mxu0 %v2515_v35 }
 0x210   :  { %1606 = vmatprep.subr.bf16.mxu0 %v2523_v36 }
 0x213   :  { %1607 = vmatpush1.bf16.msra.mxu0 %v2521_v40 }
 0x214   :  { %1608 = vmatprep.subr.bf16.mxu0 %v2529_v43 }
 0x217   :  { %1609 = vmatpush2.bf16.msra.mxu0 %v2527_v44 }
 0x218   :  { %1610 = vmatprep.subr.bf16.mxu0 %v2535_v45 }
 0x21b   :  { %1611 = vmatpush2.bf16.msra.mxu0 %v2533_v46 }
 0x21c   :  { %1612 = vmatprep.subr.bf16.mxu0 %v2541_v47 }
 0x21f   :  { %1613 = vmatpush2.bf16.msra.mxu0 %v2539_v48 }
 0x220   :  { %1614 = vmatprep.subr.bf16.mxu0 %v2547_v49 }
 0x223   :  { %1615 = vmatpush2.bf16.msra.mxu0 %v2545_v50 }
 0x224   :  { %1616 = vmatprep.subr.bf16.mxu0 %v2553_v51 }
 0x227   :  { %1617 = vmatpush2.bf16.msra.mxu0 %v2551_v52  ;;  %v2589_v52 = vld [vmem:[#allocation10 + $0xb8] sm:$0xff]  }
 0x228   :  { %1618 = vmatprep.subr.bf16.mxu0 %v2559_v53  ;;  %v2590_v53 = vld [vmem:[#allocation10 + $0xf0] sm:$0xff]  }
 0x22b   :  { %1619 = vmatpush2.bf16.msra.mxu0 %v2557_v54 }
 0x22c   :  { %1620 = vmatprep.subr.bf16.mxu0 %v2565_v56  ;;  %v2593_v56 = vld [vmem:[#allocation10 + $0xa8] sm:$0xff]  }
 0x22f   :  { %1621 = vmatpush2.bf16.msra.mxu0 %v2563_v58  ;;  %v2595_v58 = vld [vmem:[#allocation10 + $0xa0] sm:$0xff]  }
 0x230   :  { %1622 = vmatprep.subr.bf16.mxu0 %v2571_v60  ;;  %v2597_v60 = vld [vmem:[#allocation10 + $0x98] sm:$0xff]  }
 0x233   :  { %1623 = vmatpush2.bf16.msra.mxu0 %v2569_v62  ;;  %v2599_v62 = vld [vmem:[#allocation10 + $0x90] sm:$0xff]  }
 0x2b6   :  { %v1134_v3 = vpop.f32.mrf.mxu0 }
 0x2b7   :  { %v1135_v4 = vadd.f32 %v1134_v3, %v933_v1  ;;  %v2601_v1 = vld [vmem:[#allocation10 + $0x88] sm:$0xff]   ;;  %v2602_v3 = vld [vmem:[#allocation10 + $0xc0] sm:$0xff]  }
 0x2b8   :  { %v1136_v5 = vpop.f32.mrf.mxu0 }
 0x2b9   :  { %v1137_v6 = vadd.f32 %v1136_v5, %v937_v2  ;;  %v1141_v7 = vmax.f32 %v1135_v4, 0.0  ;;  %v2603_v4 = vld [vmem:[#allocation10 + $0x80] sm:$0xff]  }
 0x2ba   :  { %v1138_v8 = vpop.f32.mrf.mxu0 }
 0x2bb   :  { %v1142_v9 = vmax.f32 %v1137_v6, 0.0  ;;  %v1143_v13 = vpack.c.bf16 %v1141_v7, %v1141_v7 }
 0x2bc   :  { %v1139_v10 = vpop.f32.mrf.mxu0 }
 0x2bd   :  { %v1144_v11 = vpack.c.bf16 %v1142_v9, %v1142_v9 }
 0x2bf   :  { %1583 = vmatprep.mubr.bf16.mxu1 %v1144_v11  ;;  %1624 = vmatprep.mubr.bf16.mxu0 %v1144_v11 }
 0x2c0   :  { %1584 = vmatmul.mubr.bf16.vlgmr.msra.gmra.mxu1 %v1143_v13  ;;  %1625 = vmatmul.mubr.bf16.vlgmr.msra.gmra.mxu0 %v1143_v13 }
 0x2c1   :  { %2228 = vmatpush3.bf16.msra.mxu1 %v2573_v12 }
 0x2c2   :  { %2229 = vmatprep.subr.bf16.mxu1 %v2574_v14 }
 0x2c5   :  { %2230 = vmatpush3.bf16.msra.mxu1 %v2575_v15 }
 0x2c6   :  { %2231 = vmatprep.subr.bf16.mxu1 %v2576_v16 }
 0x2c9   :  { %2232 = vmatpush3.bf16.msra.mxu1 %v2577_v17 }
 0x2ca   :  { %2233 = vmatprep.subr.bf16.mxu1 %v2578_v18 }
 0x2cd   :  { %2234 = vmatpush3.bf16.msra.mxu1 %v2579_v19 }
 0x2ce   :  { %2235 = vmatprep.subr.bf16.mxu1 %v2580_v20 }
 0x2d1   :  { %2236 = vmatpush3.bf16.msra.mxu1 %v2581_v21 }
 0x2d2   :  { %2237 = vmatprep.subr.bf16.mxu1 %v2582_v22 }
 0x2d5   :  { %2238 = vmatpush3.bf16.msra.mxu1 %v2583_v23 }
 0x2d6   :  { %2239 = vmatprep.subr.bf16.mxu1 %v2584_v24 }
 0x2d9   :  { %2240 = vmatpush3.bf16.msra.mxu1 %v2585_v25 }
 0x2da   :  { %2241 = vmatprep.subr.bf16.mxu1 %v2586_v26 }
 0x2dd   :  { %2242 = vmatpush3.bf16.msra.mxu1 %v2587_v27 }
 0x2de   :  { %2249 = vmatprep.subr.bf16.mxu1 %v2588_v28 }
 0x380   :  { %v1585_v33 = vpop.f32.mrf.mxu1  ;;  %v1626_v34 = vpop.f32.mrf.mxu0 }
 0x381   :  { %v1586_v35 = vadd.f32 %v1585_v33, %v1214_v30  ;;  %v1627_v2 = vadd.f32 %v1626_v34, %v1222_v63 }
 0x382   :  { %v1587_v36 = vpop.f32.mrf.mxu1  ;;  %v1628_v40 = vpop.f32.mrf.mxu0 }
 0x383   :  { %v1588_v43 = vadd.f32 %v1587_v36, %v1218_v31  ;;  %v1629_v44 = vadd.f32 %v1628_v40, %v1226_v32  ;;  %v1633_v45 = vmax.f32 %v1586_v35, 0.0  ;;  %v1635_v5 = vmax.f32 %v1627_v2, 0.0 }
 0x384   :  { %v1589_v46 = vpop.f32.mrf.mxu1  ;;  %v1630_v47 = vpop.f32.mrf.mxu0 }
 0x385   :  { %v1634_v48 = vmax.f32 %v1588_v43, 0.0  ;;  %v1636_v49 = vmax.f32 %v1629_v44, 0.0  ;;  %v1637_v41 = vpack.c.bf16 %v1633_v45, %v1633_v45  ;;  %v1639_v6 = vpack.c.bf16 %v1635_v5, %v1635_v5 }
 0x386   :  { %v1590_v50 = vpop.f32.mrf.mxu1  ;;  %v1631_v51 = vpop.f32.mrf.mxu0 }
 0x387   :  { %v1638_v38 = vpack.c.bf16 %v1634_v48, %v1634_v48  ;;  %v1640_v54 = vpack.c.bf16 %v1636_v49, %v1636_v49 }
 0x389   :  { %1936 = vmatprep.mubr.bf16.mxu1 %v1638_v38 }
 0x38a   :  { %1937 = vmatmul.mubr.bf16.vlgmr.msra.gmra.mxu1 %v1637_v41 }
 0x38b   :  { %2250 = vmatpush3.bf16.msra.mxu1 %v2589_v52  ;;  %1976 = vmatprep.mubr.bf16.mxu1 %v1640_v54 }
 0x38c   :  { %2251 = vmatprep.subr.bf16.mxu1 %v2590_v53 }
 0x38f   :  { %2252 = vmatpush3.bf16.msra.mxu1 %v2591_v42 }
 0x390   :  { %2253 = vmatprep.subr.bf16.mxu1 %v2592_v55 }
 0x393   :  { %2254 = vmatpush3.bf16.msra.mxu1 %v2593_v56 }
 0x394   :  { %2255 = vmatprep.subr.bf16.mxu1 %v2594_v57 }
 0x397   :  { %2256 = vmatpush3.bf16.msra.mxu1 %v2595_v58 }
 0x398   :  { %2257 = vmatprep.subr.bf16.mxu1 %v2596_v59 }
 0x39b   :  { %2258 = vmatpush3.bf16.msra.mxu1 %v2597_v60 }
 0x39c   :  { %2259 = vmatprep.subr.bf16.mxu1 %v2598_v61 }
 0x39f   :  { %2260 = vmatpush3.bf16.msra.mxu1 %v2599_v62 }
 0x3a0   :  { %2261 = vmatprep.subr.bf16.mxu1 %v2600_v0 }
 0x3a3   :  { %2262 = vmatpush3.bf16.msra.mxu1 %v2601_v1 }
 0x3a4   :  { %2263 = vmatprep.subr.bf16.mxu1 %v2602_v3 }
 0x3a7   :  { %2264 = vmatpush3.bf16.msra.mxu1 %v2603_v4 }
 0x3aa   :  { %1977 = vmatmul.mubr.bf16.vlgmr.msra.gmra.mxu1 %v1639_v6 }
 0x44a   :  { %v2243_v7 = vpop.f32.mrf.mxu1 }
 0x44c   :  { %v2244_v8 = vpop.f32.mrf.mxu1 }
 0x44d   :  { %v2245_v37 = vadd.f32 %v2244_v8, %v2243_v7 }
 0x44e   :  { %v2246_v9 = vpop.f32.mrf.mxu1 }
 0x44f   :  { %v1939_v13 = vadd.f32 %v2245_v37, %v2194_v39 }
 0x450   :  { %v2247_v10 = vpop.f32.mrf.mxu1 }
 0x46a   :  { %v2265_v11 = vpop.f32.mrf.mxu1 }
 0x46c   :  { %v2266_v12 = vpop.f32.mrf.mxu1 }
 0x46d   :  { %v2267_v14 = vadd.f32 %v2266_v12, %v2265_v11 }
 0x46e   :  { %v2268_v15 = vpop.f32.mrf.mxu1 }
 0x46f   :  { %v1979_v16 = vadd.f32 %v2267_v14, %v1939_v13 }
 0x470   :  { %v2269_v17 = vpop.f32.mrf.mxu1 }
 0x471   :  { %1984 = vst [vmem:[#allocation11] sm:$0xff] %v1979_v16 }
 0x472   :  { %2715 = shalt.err (!%p2712_p1)
}
 0x473   :  { %1994 = dma.vmem_to_hbm [thread:$0]  %s1992_s13, 128, %s2884_s11, [#allocation4]  }
 0x474   :  { %2730 = dma.done.wait [#allocation4], 128  }
 0x475   :  { %2731 = vsyncadd [#allocation4], 4294967168 }
 0x476   :  { %1998 = vsyncpa [#allocation3], 1 }
 0x477   :  { %1999 = vsyncpa [#allocation6], 1 }
 0x478   :  { %2000 = vsyncpa [#allocation9], 1 }
 0x479   :  { %2001 = vsyncpa [#allocation4], 1 }

</bundles_post_ra>
